<compile_context>
chip_gen: v7x
topology: tpu7x:2x2x1
jax: 0.10.0
libtpu: 0.0.40
codegen_flags: <defaults>
</compile_context>

<pallas_src>
import functools
import math

import jax
import jax.numpy as jnp
from jax.experimental import pallas as pl
from jax.experimental.pallas import tpu as pltpu

_RGB_PAD = 8  # RGB / label / generator channel dims padded 3 -> 8 (f32 sublane tile)


# ------------------------------ fused kernel --------------------------------

def _vae_step_kernel(img_ref, lab_ref, eps_ref, first_ref, mask_ref,
                     wf_ref, wl_ref, wg_ref, wd_ref, wo_ref,
                     loss_ref, prev_ref, acc_ref, *, H, W, n_dim, bg):
    """One (group, t) step of the autoregressive VAE rollout, fully VMEM-resident.

    Grid: (G, T-1); axis 0 = batch group ("parallel"), axis 1 = time ("arbitrary").
    Activations are [C, bg*H*W] slabs (batch elements of the group stacked along lanes).
    """
    HW = H * W
    nl = bg * HW                       # lanes per conv
    nl2 = 2 * nl                       # frame encoder: [target | prev] stacked along lanes
    t = pl.program_id(1)
    n_t = pl.num_programs(1)

    @pl.when(t == 0)
    def _init():
        prev_ref[...] = first_ref[0]   # first "prediction" = frame[b, 0] (channel-padded)
        acc_ref[0] = 0.0
        acc_ref[1] = 0.0
        acc_ref[2] = 0.0

    mask_v = mask_ref[...]             # [9, nl2] f32, grid-invariant (built on the host)

    def conv3x3(x, w_ref):
        """x: [Cin, n] f32 (Cin multiple of 8) -> [Cout, n] f32.

        One MXU matmul per conv: 9 shifted+masked taps stacked along sublanes plus a
        ones-row (bias folded as the last weight column)."""
        n = x.shape[1]
        taps = []
        k = 0
        for di in (-1, 0, 1):
            for dj in (-1, 0, 1):
                off = di * W + dj
                if off == 0:
                    taps.append(x)
                else:
                    shifted = pltpu.roll(x, shift=(-off) % n, axis=1)
                    taps.append(shifted * mask_v[k:k + 1, :n])
                k += 1
        taps.append(jnp.ones((1, n), jnp.float32))                       # bias row
        xt = jnp.concatenate(taps, axis=0).astype(jnp.bfloat16)          # [9*Cin+1, n]
        return jnp.dot(w_ref[...], xt, preferred_element_type=jnp.float32)

    frame = img_ref[0, 0]              # [8, nl]  target frame_t (rows 3..7 are zero pad)
    label = lab_ref[0, 0]              # [8, nl]
    eps = eps_ref[0, 0]                # [N, nl]
    prev = prev_ref[...]               # [8, nl]  carried previous prediction

    # RGB encoder once on [target | prev] stacked along lanes; boundary masks prevent any
    # cross-image tap leakage.
    enc_fp = jnp.maximum(conv3x3(jnp.concatenate([frame, prev], axis=1), wf_ref), 0.0)
    enc_f = enc_fp[:, :nl]             # encoding of the target frame
    enc_p = enc_fp[:, nl:]             # encoding of the previous prediction
    enc_l = jnp.maximum(conv3x3(label, wl_ref), 0.0)

    # Gaussian predictor -> mu / logvar, reparameterization
    g_out = conv3x3(jnp.concatenate([enc_f, enc_l], axis=0), wg_ref)     # [2N, nl]
    mu = g_out[:n_dim]
    logvar = g_out[n_dim:]
    z = mu + jnp.exp(0.5 * logvar) * eps

    # Decoder fusion + generator
    fused = jnp.maximum(conv3x3(jnp.concatenate([enc_p, enc_l, z], axis=0), wd_ref), 0.0)
    pred = jax.nn.sigmoid(conv3x3(fused, wo_ref))                        # [8, nl] (rows 3..7 pad)

    prev_ref[...] = pred               # carry to t+1 (pad rows ignored by zero weight cols)

    # --- losses: kl_criterion(mu, logvar, 2), MSELoss, Generate_PSNR, per batch element ---
    # Reference hard-codes kl_criterion(..., 2) -> the 0.5 factor is kept regardless of B.
    kld = (-0.5 * jnp.sum(1.0 + logvar - mu * mu - jnp.exp(logvar))) * 0.5
    diff = pred[0:3, :] - frame[0:3, :]
    d2 = diff * diff
    inv3hw = 1.0 / (3.0 * HW)
    lane_i = jax.lax.broadcasted_iota(jnp.int32, (1, 128), 1)
    mse_row = jnp.ones((1, 128), jnp.float32)          # log(1) = 0 in unused lanes
    mse_step = 0.0
    for b in range(bg):                                 # per-b MSE (PSNR needs per-b log)
        mse_b = jnp.sum(d2[:, b * HW:(b + 1) * HW]) * inv3hw
        mse_step = mse_step + mse_b
        mse_row = jnp.where(lane_i == b, jnp.maximum(mse_b, 1e-12), mse_row)
    psnr_step = (-10.0 / math.log(10.0)) * jnp.sum(jnp.log(mse_row))

    acc_ref[0] = acc_ref[0] + mse_step
    acc_ref[1] = acc_ref[1] + kld
    acc_ref[2] = acc_ref[2] + psnr_step

    @pl.when(t == n_t - 1)
    def _fin():
        ridx = jax.lax.broadcasted_iota(jnp.int32, (1, 3, 128), 1)
        loss_ref[...] = jnp.where(ridx == 0, acc_ref[0],
                                  jnp.where(ridx == 1, acc_ref[1], acc_ref[2]))


# ------------------------------ params / host helpers ------------------------------

def _pack_conv(key, cin, cout, cin_pad=None, cout_pad=None):
    """3x3 conv weights packed for the single-matmul kernel: [Cout, 9*Cin_pad + 1] bf16
    (tap-major columns, bias folded into the last column, zero columns for pad channels)."""
    cin_pad = cin if cin_pad is None else cin_pad
    cout_pad = cout if cout_pad is None else cout_pad
    kw, kb = jax.random.split(key)
    w = 0.1 * jax.random.normal(kw, (9, cout, cin), jnp.float32)
    b = 0.02 * jax.random.normal(kb, (cout,), jnp.float32)
    w = jnp.pad(w, ((0, 0), (0, cout_pad - cout), (0, cin_pad - cin)))
    b = jnp.pad(b, (0, cout_pad - cout))
    wp = jnp.transpose(w, (1, 0, 2)).reshape(cout_pad, 9 * cin_pad)
    wp = jnp.concatenate([wp, b[:, None]], axis=1)
    return wp.astype(jnp.bfloat16)


def init_params(key, F_dim, L_dim, N_dim, D_out_dim):
    assert F_dim % 8 == 0 and L_dim % 8 == 0 and N_dim % 8 == 0 and D_out_dim % 8 == 0
    ks = jax.random.split(key, 5)
    return {
        "frame": _pack_conv(ks[0], 3, F_dim, cin_pad=_RGB_PAD),            # RGB_Encoder(3, F)
        "label": _pack_conv(ks[1], 3, L_dim, cin_pad=_RGB_PAD),            # Label_Encoder(3, L)
        "gauss": _pack_conv(ks[2], F_dim + L_dim, 2 * N_dim),              # Gaussian_Predictor
        "fuse":  _pack_conv(ks[3], F_dim + L_dim + N_dim, D_out_dim),      # Decoder_Fusion
        "gen":   _pack_conv(ks[4], D_out_dim, 3, cout_pad=_RGB_PAD),       # Generator(D, 3)
    }


def _make_masks(H, W, n_images):
    """[9, n_images*H*W] f32 boundary masks, one row per 3x3 tap (per-image positions)."""
    HW = H * W
    pos = jnp.arange(n_images * HW, dtype=jnp.int32)
    r = (pos % HW) // W
    c = pos % W
    rows = []
    for di in (-1, 0, 1):
        for dj in (-1, 0, 1):
            m = jnp.ones_like(pos, dtype=jnp.bool_)
            if di == -1:
                m = m & (r >= 1)
            if di == 1:
                m = m & (r <= H - 2)
            if dj == -1:
                m = m & (c >= 1)
            if dj == 1:
                m = m & (c <= W - 2)
            rows.append(m)
    return jnp.stack(rows, axis=0).astype(jnp.float32)


def _group_lanes(x, G, Bg):
    """[B, T', C, HW] -> [G, T', C, Bg*HW]: stack each group's batch elements along lanes."""
    B, Tp, C, HW = x.shape
    return x.reshape(G, Bg, Tp, C, HW).transpose(0, 2, 3, 1, 4).reshape(G, Tp, C, Bg * HW)


# ------------------------------ wrapper --------------------------------------

def vae_val_forward(img, label, params, eps, beta=1.0):
    """Mirrors VAE_Model.val_one_step aggregation.

    img/label: [B, T, 3, H, W] in [0,1];  eps: [B, T-1, N_dim, H*W] ~ N(0,1).
    Returns (total_loss, average_psnr).
    """
    B, T, C, H, W = img.shape
    assert C == 3
    HW = H * W
    G = 2 if (B % 2 == 0 and B >= 2) else 1        # keep both v7x TensorCores fed
    Bg = B // G
    NL = Bg * HW
    assert NL % 128 == 0, "bg*H*W must stay lane-dense (multiple of 128)"
    N = eps.shape[2]

    pad = ((0, 0), (0, 0), (0, _RGB_PAD - 3), (0, 0), (0, 0))
    img2 = _group_lanes(jnp.pad(img, pad).reshape(B, T, _RGB_PAD, HW), G, Bg)
    lab2 = _group_lanes(jnp.pad(label, pad).reshape(B, T, _RGB_PAD, HW), G, Bg)
    eps2 = _group_lanes(eps, G, Bg)
    first = img2[:, 0]                              # [G, 8, NL]
    masks = _make_masks(H, W, 2 * Bg)               # [9, 2*NL] (frame|prev stacked width)

    wf, wl, wg, wd, wo = (params[k] for k in ("frame", "label", "gauss", "fuse", "gen"))

    def imap_t1(g, t):      # target frame / label at time t+1
        return (g, t + 1, 0, 0)

    def imap_t(g, t):
        return (g, t, 0, 0)

    def imap_g(g, t):
        return (g, 0, 0)

    def imap_c(g, t):       # grid-invariant (weights / masks): VMEM resident
        return (0, 0)

    in_specs = [
        pl.BlockSpec((1, 1, _RGB_PAD, NL), imap_t1),     # img
        pl.BlockSpec((1, 1, _RGB_PAD, NL), imap_t1),     # label
        pl.BlockSpec((1, 1, N, NL), imap_t),             # eps
        pl.BlockSpec((1, _RGB_PAD, NL), imap_g),         # first frame
        pl.BlockSpec(masks.shape, imap_c),               # boundary masks
        pl.BlockSpec(wf.shape, imap_c),
        pl.BlockSpec(wl.shape, imap_c),
        pl.BlockSpec(wg.shape, imap_c),
        pl.BlockSpec(wd.shape, imap_c),
        pl.BlockSpec(wo.shape, imap_c),
    ]
    out_specs = pl.BlockSpec((1, 3, 128), lambda g, t: (g, 0, 0))

    kernel = functools.partial(_vae_step_kernel, H=H, W=W, n_dim=N, bg=Bg)
    stats = pl.pallas_call(
        kernel,
        out_shape=jax.ShapeDtypeStruct((G, 3, 128), jnp.float32),
        grid_spec=pltpu.PrefetchScalarGridSpec(
            num_scalar_prefetch=0,
            grid=(G, T - 1),
            in_specs=in_specs,
            out_specs=out_specs,
            scratch_shapes=[pltpu.VMEM((_RGB_PAD, NL), jnp.float32),   # carried prev frame
                            pltpu.SMEM((4,), jnp.float32)],            # mse/kld/psnr sums
        ),
        compiler_params=pltpu.CompilerParams(
            dimension_semantics=("parallel", "arbitrary")),
    )(img2, lab2, eps2, first, masks, wf, wl, wg, wd, wo)

    sums = stats[:, :, 0]                            # [G, 3]
    total_mse = jnp.sum(sums[:, 0])
    total_kld = jnp.sum(sums[:, 1])
    total_psnr = jnp.sum(sums[:, 2])
    # Reference: averages mse/kld over B only; PSNR over B*(T-1).
    total_loss = total_mse / B + beta * (total_kld / B)
    avg_psnr = total_psnr / (B * (T - 1))
    return total_loss, avg_psnr


# ---------------------------------- main -------------------------------------

if __name__ == "__main__":
    B, T, H, W = 2, 3, 16, 16
    F_dim, L_dim, N_dim, D_out_dim = 16, 8, 8, 16

    root = jax.random.PRNGKey(0)
    k_img, k_lab, k_eps = jax.random.split(root, 3)
    img = jax.random.uniform(k_img, (B, T, 3, H, W), jnp.float32)       # frames in [0,1]
    label = jax.random.uniform(k_lab, (B, T, 3, H, W), jnp.float32)     # pose labels in [0,1]
    eps = jax.random.normal(k_eps, (B, T - 1, N_dim, H * W), jnp.float32)

    params = init_params(jax.random.PRNGKey(42), F_dim, L_dim, N_dim, D_out_dim)

    loss, psnr = jax.jit(vae_val_forward)(img, label, params, eps)
    loss = jax.block_until_ready(loss)
    psnr = jax.block_until_ready(psnr)
    assert jnp.isfinite(loss) and jnp.isfinite(psnr)
    print("KERNEL_OK")
</pallas_src>

<mosaic_0001>
module attributes {stable_mosaic.version = 11 : i64} {
  func.func @_vae_step_kernel(%arg0: i32, %arg1: i32, %arg2: memref<1x1x8x256xf32, #tpu.memory_space<vmem>>, %arg3: memref<1x1x8x256xf32, #tpu.memory_space<vmem>>, %arg4: memref<1x1x8x256xf32, #tpu.memory_space<vmem>>, %arg5: memref<1x8x256xf32, #tpu.memory_space<vmem>>, %arg6: memref<9x512xf32, #tpu.memory_space<vmem>>, %arg7: memref<16x73xbf16, #tpu.memory_space<vmem>>, %arg8: memref<8x73xbf16, #tpu.memory_space<vmem>>, %arg9: memref<16x217xbf16, #tpu.memory_space<vmem>>, %arg10: memref<16x289xbf16, #tpu.memory_space<vmem>>, %arg11: memref<8x145xbf16, #tpu.memory_space<vmem>>, %arg12: memref<1x3x128xf32, #tpu.memory_space<vmem>>, %arg13: memref<8x256xf32, #tpu.memory_space<vmem>>, %arg14: memref<4xf32, #tpu.memory_space<smem>>) attributes {dimension_semantics = [#tpu.dimension_semantics<parallel>, #tpu.dimension_semantics<arbitrary>], iteration_bounds = array<i64: 2, 2>, scalar_prefetch = 0 : i64, scratch_operands = 2 : i64, tpu.core_type = #tpu.core_type<tc>, window_params = [{transform_indices = @transform_0, window_bounds = array<i64: 1, 1, 8, 256>}, {transform_indices = @transform_1, window_bounds = array<i64: 1, 1, 8, 256>}, {transform_indices = @transform_2, window_bounds = array<i64: 1, 1, 8, 256>}, {transform_indices = @transform_3, window_bounds = array<i64: 1, 8, 256>}, {pipeline_mode = #tpu.pipeline_mode<synchronous>, transform_indices = @transform_4, window_bounds = array<i64: 9, 512>}, {pipeline_mode = #tpu.pipeline_mode<synchronous>, transform_indices = @transform_5, window_bounds = array<i64: 16, 73>}, {pipeline_mode = #tpu.pipeline_mode<synchronous>, transform_indices = @transform_6, window_bounds = array<i64: 8, 73>}, {pipeline_mode = #tpu.pipeline_mode<synchronous>, transform_indices = @transform_7, window_bounds = array<i64: 16, 217>}, {pipeline_mode = #tpu.pipeline_mode<synchronous>, transform_indices = @transform_8, window_bounds = array<i64: 16, 289>}, {pipeline_mode = #tpu.pipeline_mode<synchronous>, transform_indices = @transform_9, window_bounds = array<i64: 8, 145>}, {transform_indices = @transform_10, window_bounds = array<i64: 1, 3, 128>}]} {
    %c0_i32 = arith.constant 0 : i32
    %0 = arith.cmpi eq, %arg1, %c0_i32 : i32
    %1 = arith.extui %0 : i1 to i32
    %c0_i32_0 = arith.constant 0 : i32
    %2 = arith.cmpi ne, %1, %c0_i32_0 : i32
    scf.if %2 {
      %c0_88 = arith.constant 0 : index
      %c0_89 = arith.constant 0 : index
      %c0_90 = arith.constant 0 : index
      %267 = vector.load %arg5[%c0_88, %c0_89, %c0_90] : memref<1x8x256xf32, #tpu.memory_space<vmem>>, vector<1x8x256xf32>
      %268 = vector.shape_cast %267 : vector<1x8x256xf32> to vector<8x256xf32>
      %c0_91 = arith.constant 0 : index
      %c0_92 = arith.constant 0 : index
      %269 = vector.load %arg13[%c0_91, %c0_92] : memref<8x256xf32, #tpu.memory_space<vmem>>, vector<8x256xf32>
      tpu.vector_store %arg13[%c0_91, %c0_92], %268 {strides = array<i32>} : memref<8x256xf32, #tpu.memory_space<vmem>>, vector<8x256xf32>,
      %cst_93 = arith.constant 0.000000e+00 : f32
      %c0_94 = arith.constant 0 : index
      %270 = memref.load %arg14[%c0_94] : memref<4xf32, #tpu.memory_space<smem>>
      memref.store %cst_93, %arg14[%c0_94] : memref<4xf32, #tpu.memory_space<smem>>
      %cst_95 = arith.constant 0.000000e+00 : f32
      %c1_96 = arith.constant 1 : index
      %271 = memref.load %arg14[%c1_96] : memref<4xf32, #tpu.memory_space<smem>>
      memref.store %cst_95, %arg14[%c1_96] : memref<4xf32, #tpu.memory_space<smem>>
      %cst_97 = arith.constant 0.000000e+00 : f32
      %c2_98 = arith.constant 2 : index
      %272 = memref.load %arg14[%c2_98] : memref<4xf32, #tpu.memory_space<smem>>
      memref.store %cst_97, %arg14[%c2_98] : memref<4xf32, #tpu.memory_space<smem>>
    } else {
    }
    %c0 = arith.constant 0 : index
    %c0_1 = arith.constant 0 : index
    %3 = vector.load %arg6[%c0, %c0_1] : memref<9x512xf32, #tpu.memory_space<vmem>>, vector<9x512xf32>
    %c0_2 = arith.constant 0 : index
    %c0_3 = arith.constant 0 : index
    %c0_4 = arith.constant 0 : index
    %c0_5 = arith.constant 0 : index
    %4 = vector.load %arg2[%c0_2, %c0_3, %c0_4, %c0_5] : memref<1x1x8x256xf32, #tpu.memory_space<vmem>>, vector<1x1x8x256xf32>
    %5 = vector.shape_cast %4 : vector<1x1x8x256xf32> to vector<8x256xf32>
    %c0_6 = arith.constant 0 : index
    %c0_7 = arith.constant 0 : index
    %c0_8 = arith.constant 0 : index
    %c0_9 = arith.constant 0 : index
    %6 = vector.load %arg3[%c0_6, %c0_7, %c0_8, %c0_9] : memref<1x1x8x256xf32, #tpu.memory_space<vmem>>, vector<1x1x8x256xf32>
    %7 = vector.shape_cast %6 : vector<1x1x8x256xf32> to vector<8x256xf32>
    %c0_10 = arith.constant 0 : index
    %c0_11 = arith.constant 0 : index
    %c0_12 = arith.constant 0 : index
    %c0_13 = arith.constant 0 : index
    %8 = vector.load %arg4[%c0_10, %c0_11, %c0_12, %c0_13] : memref<1x1x8x256xf32, #tpu.memory_space<vmem>>, vector<1x1x8x256xf32>
    %9 = vector.shape_cast %8 : vector<1x1x8x256xf32> to vector<8x256xf32>
    %c0_14 = arith.constant 0 : index
    %c0_15 = arith.constant 0 : index
    %10 = vector.load %arg13[%c0_14, %c0_15] : memref<8x256xf32, #tpu.memory_space<vmem>>, vector<8x256xf32>
    %11 = tpu.concatenate %5, %10 in 1 : vector<8x256xf32>, vector<8x256xf32> -> vector<8x512xf32>
    %c17_i32 = arith.constant 17 : i32
    %12 = tpu.dynamic_rotate %11 by %c17_i32 dim 1 : vector<8x512xf32>, i32 -> vector<8x512xf32>
    %13 = vector.extract_strided_slice %3 {offsets = [0, 0], sizes = [1, 512], strides = [1, 1]} : vector<9x512xf32> to vector<1x512xf32>
    %14 = vector.broadcast %13 : vector<1x512xf32> to vector<8x512xf32>
    %15 = arith.mulf %12, %14 : vector<8x512xf32>
    %c16_i32 = arith.constant 16 : i32
    %16 = tpu.dynamic_rotate %11 by %c16_i32 dim 1 : vector<8x512xf32>, i32 -> vector<8x512xf32>
    %17 = vector.extract_strided_slice %3 {offsets = [1, 0], sizes = [1, 512], strides = [1, 1]} : vector<9x512xf32> to vector<1x512xf32>
    %18 = vector.broadcast %17 : vector<1x512xf32> to vector<8x512xf32>
    %19 = arith.mulf %16, %18 : vector<8x512xf32>
    %c15_i32 = arith.constant 15 : i32
    %20 = tpu.dynamic_rotate %11 by %c15_i32 dim 1 : vector<8x512xf32>, i32 -> vector<8x512xf32>
    %21 = vector.extract_strided_slice %3 {offsets = [2, 0], sizes = [1, 512], strides = [1, 1]} : vector<9x512xf32> to vector<1x512xf32>
    %22 = vector.broadcast %21 : vector<1x512xf32> to vector<8x512xf32>
    %23 = arith.mulf %20, %22 : vector<8x512xf32>
    %c1_i32 = arith.constant 1 : i32
    %24 = tpu.dynamic_rotate %11 by %c1_i32 dim 1 : vector<8x512xf32>, i32 -> vector<8x512xf32>
    %25 = vector.extract_strided_slice %3 {offsets = [3, 0], sizes = [1, 512], strides = [1, 1]} : vector<9x512xf32> to vector<1x512xf32>
    %26 = vector.broadcast %25 : vector<1x512xf32> to vector<8x512xf32>
    %27 = arith.mulf %24, %26 : vector<8x512xf32>
    %c511_i32 = arith.constant 511 : i32
    %28 = tpu.dynamic_rotate %11 by %c511_i32 dim 1 : vector<8x512xf32>, i32 -> vector<8x512xf32>
    %29 = vector.extract_strided_slice %3 {offsets = [5, 0], sizes = [1, 512], strides = [1, 1]} : vector<9x512xf32> to vector<1x512xf32>
    %30 = vector.broadcast %29 : vector<1x512xf32> to vector<8x512xf32>
    %31 = arith.mulf %28, %30 : vector<8x512xf32>
    %c497_i32 = arith.constant 497 : i32
    %32 = tpu.dynamic_rotate %11 by %c497_i32 dim 1 : vector<8x512xf32>, i32 -> vector<8x512xf32>
    %33 = vector.extract_strided_slice %3 {offsets = [6, 0], sizes = [1, 512], strides = [1, 1]} : vector<9x512xf32> to vector<1x512xf32>
    %34 = vector.broadcast %33 : vector<1x512xf32> to vector<8x512xf32>
    %35 = arith.mulf %32, %34 : vector<8x512xf32>
    %c496_i32 = arith.constant 496 : i32
    %36 = tpu.dynamic_rotate %11 by %c496_i32 dim 1 : vector<8x512xf32>, i32 -> vector<8x512xf32>
    %37 = vector.extract_strided_slice %3 {offsets = [7, 0], sizes = [1, 512], strides = [1, 1]} : vector<9x512xf32> to vector<1x512xf32>
    %38 = vector.broadcast %37 : vector<1x512xf32> to vector<8x512xf32>
    %39 = arith.mulf %36, %38 : vector<8x512xf32>
    %c495_i32 = arith.constant 495 : i32
    %40 = tpu.dynamic_rotate %11 by %c495_i32 dim 1 : vector<8x512xf32>, i32 -> vector<8x512xf32>
    %41 = vector.extract_strided_slice %3 {offsets = [8, 0], sizes = [1, 512], strides = [1, 1]} : vector<9x512xf32> to vector<1x512xf32>
    %42 = vector.broadcast %41 : vector<1x512xf32> to vector<8x512xf32>
    %43 = arith.mulf %40, %42 : vector<8x512xf32>
    %cst = arith.constant 1.000000e+00 : f32
    %44 = vector.broadcast %cst : f32 to vector<1x512xf32>
    %45 = tpu.concatenate %15, %19, %23, %27, %11, %31, %35, %39, %43, %44 in 0 : vector<8x512xf32>, vector<8x512xf32>, vector<8x512xf32>, vector<8x512xf32>, vector<8x512xf32>, vector<8x512xf32>, vector<8x512xf32>, vector<8x512xf32>, vector<8x512xf32>, vector<1x512xf32> -> vector<73x512xf32>
    %46 = arith.truncf %45 : vector<73x512xf32> to vector<73x512xbf16>
    %c0_16 = arith.constant 0 : index
    %c0_17 = arith.constant 0 : index
    %47 = vector.load %arg7[%c0_16, %c0_17] : memref<16x73xbf16, #tpu.memory_space<vmem>>, vector<16x73xbf16>
    %cst_18 = arith.constant dense<0.000000e+00> : vector<16x512xf32>
    %48 = tpu.matmul %47, %46, %cst_18 {dimension_numbers = #tpu.dot_dimension_numbers<[1], [0], [0], [1], [0, 0, 1, 1], [], []>} : vector<16x73xbf16>, vector<73x512xbf16>, vector<16x512xf32> -> vector<16x512xf32>
    %cst_19 = arith.constant 0.000000e+00 : f32
    %49 = vector.broadcast %cst_19 : f32 to vector<16x512xf32>
    %50 = arith.maximumf %48, %49 : vector<16x512xf32>
    %51 = vector.extract_strided_slice %50 {offsets = [0, 0], sizes = [16, 256], strides = [1, 1]} : vector<16x512xf32> to vector<16x256xf32>
    %52 = vector.extract_strided_slice %50 {offsets = [0, 256], sizes = [16, 256], strides = [1, 1]} : vector<16x512xf32> to vector<16x256xf32>
    %c17_i32_20 = arith.constant 17 : i32
    %53 = tpu.dynamic_rotate %7 by %c17_i32_20 dim 1 : vector<8x256xf32>, i32 -> vector<8x256xf32>
    %54 = vector.extract_strided_slice %3 {offsets = [0, 0], sizes = [1, 256], strides = [1, 1]} : vector<9x512xf32> to vector<1x256xf32>
    %55 = vector.broadcast %54 : vector<1x256xf32> to vector<8x256xf32>
    %56 = arith.mulf %53, %55 : vector<8x256xf32>
    %c16_i32_21 = arith.constant 16 : i32
    %57 = tpu.dynamic_rotate %7 by %c16_i32_21 dim 1 : vector<8x256xf32>, i32 -> vector<8x256xf32>
    %58 = vector.extract_strided_slice %3 {offsets = [1, 0], sizes = [1, 256], strides = [1, 1]} : vector<9x512xf32> to vector<1x256xf32>
    %59 = vector.broadcast %58 : vector<1x256xf32> to vector<8x256xf32>
    %60 = arith.mulf %57, %59 : vector<8x256xf32>
    %c15_i32_22 = arith.constant 15 : i32
    %61 = tpu.dynamic_rotate %7 by %c15_i32_22 dim 1 : vector<8x256xf32>, i32 -> vector<8x256xf32>
    %62 = vector.extract_strided_slice %3 {offsets = [2, 0], sizes = [1, 256], strides = [1, 1]} : vector<9x512xf32> to vector<1x256xf32>
    %63 = vector.broadcast %62 : vector<1x256xf32> to vector<8x256xf32>
    %64 = arith.mulf %61, %63 : vector<8x256xf32>
    %c1_i32_23 = arith.constant 1 : i32
    %65 = tpu.dynamic_rotate %7 by %c1_i32_23 dim 1 : vector<8x256xf32>, i32 -> vector<8x256xf32>
    %66 = vector.extract_strided_slice %3 {offsets = [3, 0], sizes = [1, 256], strides = [1, 1]} : vector<9x512xf32> to vector<1x256xf32>
    %67 = vector.broadcast %66 : vector<1x256xf32> to vector<8x256xf32>
    %68 = arith.mulf %65, %67 : vector<8x256xf32>
    %c255_i32 = arith.constant 255 : i32
    %69 = tpu.dynamic_rotate %7 by %c255_i32 dim 1 : vector<8x256xf32>, i32 -> vector<8x256xf32>
    %70 = vector.extract_strided_slice %3 {offsets = [5, 0], sizes = [1, 256], strides = [1, 1]} : vector<9x512xf32> to vector<1x256xf32>
    %71 = vector.broadcast %70 : vector<1x256xf32> to vector<8x256xf32>
    %72 = arith.mulf %69, %71 : vector<8x256xf32>
    %c241_i32 = arith.constant 241 : i32
    %73 = tpu.dynamic_rotate %7 by %c241_i32 dim 1 : vector<8x256xf32>, i32 -> vector<8x256xf32>
    %74 = vector.extract_strided_slice %3 {offsets = [6, 0], sizes = [1, 256], strides = [1, 1]} : vector<9x512xf32> to vector<1x256xf32>
    %75 = vector.broadcast %74 : vector<1x256xf32> to vector<8x256xf32>
    %76 = arith.mulf %73, %75 : vector<8x256xf32>
    %c240_i32 = arith.constant 240 : i32
    %77 = tpu.dynamic_rotate %7 by %c240_i32 dim 1 : vector<8x256xf32>, i32 -> vector<8x256xf32>
    %78 = vector.extract_strided_slice %3 {offsets = [7, 0], sizes = [1, 256], strides = [1, 1]} : vector<9x512xf32> to vector<1x256xf32>
    %79 = vector.broadcast %78 : vector<1x256xf32> to vector<8x256xf32>
    %80 = arith.mulf %77, %79 : vector<8x256xf32>
    %c239_i32 = arith.constant 239 : i32
    %81 = tpu.dynamic_rotate %7 by %c239_i32 dim 1 : vector<8x256xf32>, i32 -> vector<8x256xf32>
    %82 = vector.extract_strided_slice %3 {offsets = [8, 0], sizes = [1, 256], strides = [1, 1]} : vector<9x512xf32> to vector<1x256xf32>
    %83 = vector.broadcast %82 : vector<1x256xf32> to vector<8x256xf32>
    %84 = arith.mulf %81, %83 : vector<8x256xf32>
    %cst_24 = arith.constant 1.000000e+00 : f32
    %85 = vector.broadcast %cst_24 : f32 to vector<1x256xf32>
    %86 = tpu.concatenate %56, %60, %64, %68, %7, %72, %76, %80, %84, %85 in 0 : vector<8x256xf32>, vector<8x256xf32>, vector<8x256xf32>, vector<8x256xf32>, vector<8x256xf32>, vector<8x256xf32>, vector<8x256xf32>, vector<8x256xf32>, vector<8x256xf32>, vector<1x256xf32> -> vector<73x256xf32>
    %87 = arith.truncf %86 : vector<73x256xf32> to vector<73x256xbf16>
    %c0_25 = arith.constant 0 : index
    %c0_26 = arith.constant 0 : index
    %88 = vector.load %arg8[%c0_25, %c0_26] : memref<8x73xbf16, #tpu.memory_space<vmem>>, vector<8x73xbf16>
    %cst_27 = arith.constant dense<0.000000e+00> : vector<8x256xf32>
    %89 = tpu.matmul %88, %87, %cst_27 {dimension_numbers = #tpu.dot_dimension_numbers<[1], [0], [0], [1], [0, 0, 1, 1], [], []>} : vector<8x73xbf16>, vector<73x256xbf16>, vector<8x256xf32> -> vector<8x256xf32>
    %cst_28 = arith.constant 0.000000e+00 : f32
    %90 = vector.broadcast %cst_28 : f32 to vector<8x256xf32>
    %91 = arith.maximumf %89, %90 : vector<8x256xf32>
    %92 = tpu.concatenate %51, %91 in 0 : vector<16x256xf32>, vector<8x256xf32> -> vector<24x256xf32>
    %c17_i32_29 = arith.constant 17 : i32
    %93 = tpu.dynamic_rotate %92 by %c17_i32_29 dim 1 : vector<24x256xf32>, i32 -> vector<24x256xf32>
    %94 = vector.extract_strided_slice %3 {offsets = [0, 0], sizes = [1, 256], strides = [1, 1]} : vector<9x512xf32> to vector<1x256xf32>
    %95 = vector.broadcast %94 : vector<1x256xf32> to vector<24x256xf32>
    %96 = arith.mulf %93, %95 : vector<24x256xf32>
    %c16_i32_30 = arith.constant 16 : i32
    %97 = tpu.dynamic_rotate %92 by %c16_i32_30 dim 1 : vector<24x256xf32>, i32 -> vector<24x256xf32>
    %98 = vector.extract_strided_slice %3 {offsets = [1, 0], sizes = [1, 256], strides = [1, 1]} : vector<9x512xf32> to vector<1x256xf32>
    %99 = vector.broadcast %98 : vector<1x256xf32> to vector<24x256xf32>
    %100 = arith.mulf %97, %99 : vector<24x256xf32>
    %c15_i32_31 = arith.constant 15 : i32
    %101 = tpu.dynamic_rotate %92 by %c15_i32_31 dim 1 : vector<24x256xf32>, i32 -> vector<24x256xf32>
    %102 = vector.extract_strided_slice %3 {offsets = [2, 0], sizes = [1, 256], strides = [1, 1]} : vector<9x512xf32> to vector<1x256xf32>
    %103 = vector.broadcast %102 : vector<1x256xf32> to vector<24x256xf32>
    %104 = arith.mulf %101, %103 : vector<24x256xf32>
    %c1_i32_32 = arith.constant 1 : i32
    %105 = tpu.dynamic_rotate %92 by %c1_i32_32 dim 1 : vector<24x256xf32>, i32 -> vector<24x256xf32>
    %106 = vector.extract_strided_slice %3 {offsets = [3, 0], sizes = [1, 256], strides = [1, 1]} : vector<9x512xf32> to vector<1x256xf32>
    %107 = vector.broadcast %106 : vector<1x256xf32> to vector<24x256xf32>
    %108 = arith.mulf %105, %107 : vector<24x256xf32>
    %c255_i32_33 = arith.constant 255 : i32
    %109 = tpu.dynamic_rotate %92 by %c255_i32_33 dim 1 : vector<24x256xf32>, i32 -> vector<24x256xf32>
    %110 = vector.extract_strided_slice %3 {offsets = [5, 0], sizes = [1, 256], strides = [1, 1]} : vector<9x512xf32> to vector<1x256xf32>
    %111 = vector.broadcast %110 : vector<1x256xf32> to vector<24x256xf32>
    %112 = arith.mulf %109, %111 : vector<24x256xf32>
    %c241_i32_34 = arith.constant 241 : i32
    %113 = tpu.dynamic_rotate %92 by %c241_i32_34 dim 1 : vector<24x256xf32>, i32 -> vector<24x256xf32>
    %114 = vector.extract_strided_slice %3 {offsets = [6, 0], sizes = [1, 256], strides = [1, 1]} : vector<9x512xf32> to vector<1x256xf32>
    %115 = vector.broadcast %114 : vector<1x256xf32> to vector<24x256xf32>
    %116 = arith.mulf %113, %115 : vector<24x256xf32>
    %c240_i32_35 = arith.constant 240 : i32
    %117 = tpu.dynamic_rotate %92 by %c240_i32_35 dim 1 : vector<24x256xf32>, i32 -> vector<24x256xf32>
    %118 = vector.extract_strided_slice %3 {offsets = [7, 0], sizes = [1, 256], strides = [1, 1]} : vector<9x512xf32> to vector<1x256xf32>
    %119 = vector.broadcast %118 : vector<1x256xf32> to vector<24x256xf32>
    %120 = arith.mulf %117, %119 : vector<24x256xf32>
    %c239_i32_36 = arith.constant 239 : i32
    %121 = tpu.dynamic_rotate %92 by %c239_i32_36 dim 1 : vector<24x256xf32>, i32 -> vector<24x256xf32>
    %122 = vector.extract_strided_slice %3 {offsets = [8, 0], sizes = [1, 256], strides = [1, 1]} : vector<9x512xf32> to vector<1x256xf32>
    %123 = vector.broadcast %122 : vector<1x256xf32> to vector<24x256xf32>
    %124 = arith.mulf %121, %123 : vector<24x256xf32>
    %cst_37 = arith.constant 1.000000e+00 : f32
    %125 = vector.broadcast %cst_37 : f32 to vector<1x256xf32>
    %126 = tpu.concatenate %96, %100, %104, %108, %92, %112, %116, %120, %124, %125 in 0 : vector<24x256xf32>, vector<24x256xf32>, vector<24x256xf32>, vector<24x256xf32>, vector<24x256xf32>, vector<24x256xf32>, vector<24x256xf32>, vector<24x256xf32>, vector<24x256xf32>, vector<1x256xf32> -> vector<217x256xf32>
    %127 = arith.truncf %126 : vector<217x256xf32> to vector<217x256xbf16>
    %c0_38 = arith.constant 0 : index
    %c0_39 = arith.constant 0 : index
    %128 = vector.load %arg9[%c0_38, %c0_39] : memref<16x217xbf16, #tpu.memory_space<vmem>>, vector<16x217xbf16>
    %cst_40 = arith.constant dense<0.000000e+00> : vector<16x256xf32>
    %129 = tpu.matmul %128, %127, %cst_40 {dimension_numbers = #tpu.dot_dimension_numbers<[1], [0], [0], [1], [0, 0, 1, 1], [], []>} : vector<16x217xbf16>, vector<217x256xbf16>, vector<16x256xf32> -> vector<16x256xf32>
    %130 = vector.extract_strided_slice %129 {offsets = [0, 0], sizes = [8, 256], strides = [1, 1]} : vector<16x256xf32> to vector<8x256xf32>
    %131 = vector.extract_strided_slice %129 {offsets = [8, 0], sizes = [8, 256], strides = [1, 1]} : vector<16x256xf32> to vector<8x256xf32>
    %cst_41 = arith.constant 5.000000e-01 : f32
    %132 = vector.broadcast %cst_41 : f32 to vector<8x256xf32>
    %133 = arith.mulf %132, %131 : vector<8x256xf32>
    %134 = math.exp %133 : vector<8x256xf32>
    %135 = arith.mulf %134, %9 : vector<8x256xf32>
    %136 = arith.addf %130, %135 : vector<8x256xf32>
    %137 = tpu.concatenate %52, %91, %136 in 0 : vector<16x256xf32>, vector<8x256xf32>, vector<8x256xf32> -> vector<32x256xf32>
    %c17_i32_42 = arith.constant 17 : i32
    %138 = tpu.dynamic_rotate %137 by %c17_i32_42 dim 1 : vector<32x256xf32>, i32 -> vector<32x256xf32>
    %139 = vector.extract_strided_slice %3 {offsets = [0, 0], sizes = [1, 256], strides = [1, 1]} : vector<9x512xf32> to vector<1x256xf32>
    %140 = vector.broadcast %139 : vector<1x256xf32> to vector<32x256xf32>
    %141 = arith.mulf %138, %140 : vector<32x256xf32>
    %c16_i32_43 = arith.constant 16 : i32
    %142 = tpu.dynamic_rotate %137 by %c16_i32_43 dim 1 : vector<32x256xf32>, i32 -> vector<32x256xf32>
    %143 = vector.extract_strided_slice %3 {offsets = [1, 0], sizes = [1, 256], strides = [1, 1]} : vector<9x512xf32> to vector<1x256xf32>
    %144 = vector.broadcast %143 : vector<1x256xf32> to vector<32x256xf32>
    %145 = arith.mulf %142, %144 : vector<32x256xf32>
    %c15_i32_44 = arith.constant 15 : i32
    %146 = tpu.dynamic_rotate %137 by %c15_i32_44 dim 1 : vector<32x256xf32>, i32 -> vector<32x256xf32>
    %147 = vector.extract_strided_slice %3 {offsets = [2, 0], sizes = [1, 256], strides = [1, 1]} : vector<9x512xf32> to vector<1x256xf32>
    %148 = vector.broadcast %147 : vector<1x256xf32> to vector<32x256xf32>
    %149 = arith.mulf %146, %148 : vector<32x256xf32>
    %c1_i32_45 = arith.constant 1 : i32
    %150 = tpu.dynamic_rotate %137 by %c1_i32_45 dim 1 : vector<32x256xf32>, i32 -> vector<32x256xf32>
    %151 = vector.extract_strided_slice %3 {offsets = [3, 0], sizes = [1, 256], strides = [1, 1]} : vector<9x512xf32> to vector<1x256xf32>
    %152 = vector.broadcast %151 : vector<1x256xf32> to vector<32x256xf32>
    %153 = arith.mulf %150, %152 : vector<32x256xf32>
    %c255_i32_46 = arith.constant 255 : i32
    %154 = tpu.dynamic_rotate %137 by %c255_i32_46 dim 1 : vector<32x256xf32>, i32 -> vector<32x256xf32>
    %155 = vector.extract_strided_slice %3 {offsets = [5, 0], sizes = [1, 256], strides = [1, 1]} : vector<9x512xf32> to vector<1x256xf32>
    %156 = vector.broadcast %155 : vector<1x256xf32> to vector<32x256xf32>
    %157 = arith.mulf %154, %156 : vector<32x256xf32>
    %c241_i32_47 = arith.constant 241 : i32
    %158 = tpu.dynamic_rotate %137 by %c241_i32_47 dim 1 : vector<32x256xf32>, i32 -> vector<32x256xf32>
    %159 = vector.extract_strided_slice %3 {offsets = [6, 0], sizes = [1, 256], strides = [1, 1]} : vector<9x512xf32> to vector<1x256xf32>
    %160 = vector.broadcast %159 : vector<1x256xf32> to vector<32x256xf32>
    %161 = arith.mulf %158, %160 : vector<32x256xf32>
    %c240_i32_48 = arith.constant 240 : i32
    %162 = tpu.dynamic_rotate %137 by %c240_i32_48 dim 1 : vector<32x256xf32>, i32 -> vector<32x256xf32>
    %163 = vector.extract_strided_slice %3 {offsets = [7, 0], sizes = [1, 256], strides = [1, 1]} : vector<9x512xf32> to vector<1x256xf32>
    %164 = vector.broadcast %163 : vector<1x256xf32> to vector<32x256xf32>
    %165 = arith.mulf %162, %164 : vector<32x256xf32>
    %c239_i32_49 = arith.constant 239 : i32
    %166 = tpu.dynamic_rotate %137 by %c239_i32_49 dim 1 : vector<32x256xf32>, i32 -> vector<32x256xf32>
    %167 = vector.extract_strided_slice %3 {offsets = [8, 0], sizes = [1, 256], strides = [1, 1]} : vector<9x512xf32> to vector<1x256xf32>
    %168 = vector.broadcast %167 : vector<1x256xf32> to vector<32x256xf32>
    %169 = arith.mulf %166, %168 : vector<32x256xf32>
    %cst_50 = arith.constant 1.000000e+00 : f32
    %170 = vector.broadcast %cst_50 : f32 to vector<1x256xf32>
    %171 = tpu.concatenate %141, %145, %149, %153, %137, %157, %161, %165, %169, %170 in 0 : vector<32x256xf32>, vector<32x256xf32>, vector<32x256xf32>, vector<32x256xf32>, vector<32x256xf32>, vector<32x256xf32>, vector<32x256xf32>, vector<32x256xf32>, vector<32x256xf32>, vector<1x256xf32> -> vector<289x256xf32>
    %172 = arith.truncf %171 : vector<289x256xf32> to vector<289x256xbf16>
    %c0_51 = arith.constant 0 : index
    %c0_52 = arith.constant 0 : index
    %173 = vector.load %arg10[%c0_51, %c0_52] : memref<16x289xbf16, #tpu.memory_space<vmem>>, vector<16x289xbf16>
    %cst_53 = arith.constant dense<0.000000e+00> : vector<16x256xf32>
    %174 = tpu.matmul %173, %172, %cst_53 {dimension_numbers = #tpu.dot_dimension_numbers<[1], [0], [0], [1], [0, 0, 1, 1], [], []>} : vector<16x289xbf16>, vector<289x256xbf16>, vector<16x256xf32> -> vector<16x256xf32>
    %cst_54 = arith.constant 0.000000e+00 : f32
    %175 = vector.broadcast %cst_54 : f32 to vector<16x256xf32>
    %176 = arith.maximumf %174, %175 : vector<16x256xf32>
    %c17_i32_55 = arith.constant 17 : i32
    %177 = tpu.dynamic_rotate %176 by %c17_i32_55 dim 1 : vector<16x256xf32>, i32 -> vector<16x256xf32>
    %178 = vector.extract_strided_slice %3 {offsets = [0, 0], sizes = [1, 256], strides = [1, 1]} : vector<9x512xf32> to vector<1x256xf32>
    %179 = vector.broadcast %178 : vector<1x256xf32> to vector<16x256xf32>
    %180 = arith.mulf %177, %179 : vector<16x256xf32>
    %c16_i32_56 = arith.constant 16 : i32
    %181 = tpu.dynamic_rotate %176 by %c16_i32_56 dim 1 : vector<16x256xf32>, i32 -> vector<16x256xf32>
    %182 = vector.extract_strided_slice %3 {offsets = [1, 0], sizes = [1, 256], strides = [1, 1]} : vector<9x512xf32> to vector<1x256xf32>
    %183 = vector.broadcast %182 : vector<1x256xf32> to vector<16x256xf32>
    %184 = arith.mulf %181, %183 : vector<16x256xf32>
    %c15_i32_57 = arith.constant 15 : i32
    %185 = tpu.dynamic_rotate %176 by %c15_i32_57 dim 1 : vector<16x256xf32>, i32 -> vector<16x256xf32>
    %186 = vector.extract_strided_slice %3 {offsets = [2, 0], sizes = [1, 256], strides = [1, 1]} : vector<9x512xf32> to vector<1x256xf32>
    %187 = vector.broadcast %186 : vector<1x256xf32> to vector<16x256xf32>
    %188 = arith.mulf %185, %187 : vector<16x256xf32>
    %c1_i32_58 = arith.constant 1 : i32
    %189 = tpu.dynamic_rotate %176 by %c1_i32_58 dim 1 : vector<16x256xf32>, i32 -> vector<16x256xf32>
    %190 = vector.extract_strided_slice %3 {offsets = [3, 0], sizes = [1, 256], strides = [1, 1]} : vector<9x512xf32> to vector<1x256xf32>
    %191 = vector.broadcast %190 : vector<1x256xf32> to vector<16x256xf32>
    %192 = arith.mulf %189, %191 : vector<16x256xf32>
    %c255_i32_59 = arith.constant 255 : i32
    %193 = tpu.dynamic_rotate %176 by %c255_i32_59 dim 1 : vector<16x256xf32>, i32 -> vector<16x256xf32>
    %194 = vector.extract_strided_slice %3 {offsets = [5, 0], sizes = [1, 256], strides = [1, 1]} : vector<9x512xf32> to vector<1x256xf32>
    %195 = vector.broadcast %194 : vector<1x256xf32> to vector<16x256xf32>
    %196 = arith.mulf %193, %195 : vector<16x256xf32>
    %c241_i32_60 = arith.constant 241 : i32
    %197 = tpu.dynamic_rotate %176 by %c241_i32_60 dim 1 : vector<16x256xf32>, i32 -> vector<16x256xf32>
    %198 = vector.extract_strided_slice %3 {offsets = [6, 0], sizes = [1, 256], strides = [1, 1]} : vector<9x512xf32> to vector<1x256xf32>
    %199 = vector.broadcast %198 : vector<1x256xf32> to vector<16x256xf32>
    %200 = arith.mulf %197, %199 : vector<16x256xf32>
    %c240_i32_61 = arith.constant 240 : i32
    %201 = tpu.dynamic_rotate %176 by %c240_i32_61 dim 1 : vector<16x256xf32>, i32 -> vector<16x256xf32>
    %202 = vector.extract_strided_slice %3 {offsets = [7, 0], sizes = [1, 256], strides = [1, 1]} : vector<9x512xf32> to vector<1x256xf32>
    %203 = vector.broadcast %202 : vector<1x256xf32> to vector<16x256xf32>
    %204 = arith.mulf %201, %203 : vector<16x256xf32>
    %c239_i32_62 = arith.constant 239 : i32
    %205 = tpu.dynamic_rotate %176 by %c239_i32_62 dim 1 : vector<16x256xf32>, i32 -> vector<16x256xf32>
    %206 = vector.extract_strided_slice %3 {offsets = [8, 0], sizes = [1, 256], strides = [1, 1]} : vector<9x512xf32> to vector<1x256xf32>
    %207 = vector.broadcast %206 : vector<1x256xf32> to vector<16x256xf32>
    %208 = arith.mulf %205, %207 : vector<16x256xf32>
    %cst_63 = arith.constant 1.000000e+00 : f32
    %209 = vector.broadcast %cst_63 : f32 to vector<1x256xf32>
    %210 = tpu.concatenate %180, %184, %188, %192, %176, %196, %200, %204, %208, %209 in 0 : vector<16x256xf32>, vector<16x256xf32>, vector<16x256xf32>, vector<16x256xf32>, vector<16x256xf32>, vector<16x256xf32>, vector<16x256xf32>, vector<16x256xf32>, vector<16x256xf32>, vector<1x256xf32> -> vector<145x256xf32>
    %211 = arith.truncf %210 : vector<145x256xf32> to vector<145x256xbf16>
    %c0_64 = arith.constant 0 : index
    %c0_65 = arith.constant 0 : index
    %212 = vector.load %arg11[%c0_64, %c0_65] : memref<8x145xbf16, #tpu.memory_space<vmem>>, vector<8x145xbf16>
    %cst_66 = arith.constant dense<0.000000e+00> : vector<8x256xf32>
    %213 = tpu.matmul %212, %211, %cst_66 {dimension_numbers = #tpu.dot_dimension_numbers<[1], [0], [0], [1], [0, 0, 1, 1], [], []>} : vector<8x145xbf16>, vector<145x256xbf16>, vector<8x256xf32> -> vector<8x256xf32>
    %214 = arith.negf %213 : vector<8x256xf32>
    %215 = math.exp %214 : vector<8x256xf32>
    %cst_67 = arith.constant 1.000000e+00 : f32
    %216 = vector.broadcast %cst_67 : f32 to vector<8x256xf32>
    %217 = arith.addf %216, %215 : vector<8x256xf32>
    %218 = arith.divf %216, %217 : vector<8x256xf32>
    %c0_68 = arith.constant 0 : index
    %c0_69 = arith.constant 0 : index
    %219 = vector.load %arg13[%c0_68, %c0_69] : memref<8x256xf32, #tpu.memory_space<vmem>>, vector<8x256xf32>
    tpu.vector_store %arg13[%c0_68, %c0_69], %218 {strides = array<i32>} : memref<8x256xf32, #tpu.memory_space<vmem>>, vector<8x256xf32>,
    %cst_70 = arith.constant 1.000000e+00 : f32
    %220 = vector.broadcast %cst_70 : f32 to vector<8x256xf32>
    %221 = arith.addf %220, %131 : vector<8x256xf32>
    %222 = arith.mulf %130, %130 : vector<8x256xf32>
    %223 = arith.subf %221, %222 : vector<8x256xf32>
    %224 = math.exp %131 : vector<8x256xf32>
    %225 = arith.subf %223, %224 : vector<8x256xf32>
    %226 = vector.shape_cast %225 : vector<8x256xf32> to vector<1x8x256xf32>
    %cst_71 = arith.constant dense<0.000000e+00> : vector<1xf32>
    %227 = vector.multi_reduction <add>, %226, %cst_71 [1, 2] : vector<1x8x256xf32> to vector<1xf32>
    %228 = vector.shape_cast %227 : vector<1xf32> to vector<1x1x1xf32>
    %229 = vector.extract %228[0, 0, 0] : f32 from vector<1x1x1xf32>
    %cst_72 = arith.constant -5.000000e-01 : f32
    %230 = arith.mulf %cst_72, %229 : f32
    %cst_73 = arith.constant 5.000000e-01 : f32
    %231 = arith.mulf %230, %cst_73 : f32
    %232 = vector.extract_strided_slice %218 {offsets = [0, 0], sizes = [3, 256], strides = [1, 1]} : vector<8x256xf32> to vector<3x256xf32>
    %233 = vector.extract_strided_slice %5 {offsets = [0, 0], sizes = [3, 256], strides = [1, 1]} : vector<8x256xf32> to vector<3x256xf32>
    %234 = arith.subf %232, %233 : vector<3x256xf32>
    %235 = arith.mulf %234, %234 : vector<3x256xf32>
    %236 = tpu.iota {dimensions = array<i32: 1>} : vector<1x128xi32>
    %cst_74 = arith.constant 1.000000e+00 : f32
    %237 = vector.broadcast %cst_74 : f32 to vector<1x128xf32>
    %238 = vector.shape_cast %235 : vector<3x256xf32> to vector<1x3x256xf32>
    %cst_75 = arith.constant dense<0.000000e+00> : vector<1xf32>
    %239 = vector.multi_reduction <add>, %238, %cst_75 [1, 2] : vector<1x3x256xf32> to vector<1xf32>
    %240 = vector.shape_cast %239 : vector<1xf32> to vector<1x1x1xf32>
    %241 = vector.extract %240[0, 0, 0] : f32 from vector<1x1x1xf32>
    %cst_76 = arith.constant 0.00130208337 : f32
    %242 = arith.mulf %241, %cst_76 : f32
    %cst_77 = arith.constant 0.000000e+00 : f32
    %243 = arith.addf %cst_77, %242 : f32
    %c0_i32_78 = arith.constant 0 : i32
    %244 = vector.broadcast %c0_i32_78 : i32 to vector<1x128xi32>
    %245 = arith.cmpi eq, %236, %244 : vector<1x128xi32>
    %cst_79 = arith.constant 9.99999996E-13 : f32
    %246 = arith.maximumf %242, %cst_79 : f32
    %247 = vector.broadcast %246 : f32 to vector<1x128xf32>
    %248 = arith.select %245, %247, %237 : vector<1x128xi1>, vector<1x128xf32>
    %249 = math.log %248 : vector<1x128xf32>
    %250 = vector.shape_cast %249 : vector<1x128xf32> to vector<1x1x128xf32>
    %cst_80 = arith.constant dense<0.000000e+00> : vector<1xf32>
    %251 = vector.multi_reduction <add>, %250, %cst_80 [1, 2] : vector<1x1x128xf32> to vector<1xf32>
    %252 = vector.shape_cast %251 : vector<1xf32> to vector<1x1x1xf32>
    %253 = vector.extract %252[0, 0, 0] : f32 from vector<1x1x1xf32>
    %cst_81 = arith.constant -4.34294462 : f32
    %254 = arith.mulf %cst_81, %253 : f32
    %c0_82 = arith.constant 0 : index
    %255 = memref.load %arg14[%c0_82] : memref<4xf32, #tpu.memory_space<smem>>
    %256 = arith.addf %255, %243 : f32
    %c0_83 = arith.constant 0 : index
    %257 = memref.load %arg14[%c0_83] : memref<4xf32, #tpu.memory_space<smem>>
    memref.store %256, %arg14[%c0_83] : memref<4xf32, #tpu.memory_space<smem>>
    %c1 = arith.constant 1 : index
    %258 = memref.load %arg14[%c1] : memref<4xf32, #tpu.memory_space<smem>>
    %259 = arith.addf %258, %231 : f32
    %c1_84 = arith.constant 1 : index
    %260 = memref.load %arg14[%c1_84] : memref<4xf32, #tpu.memory_space<smem>>
    memref.store %259, %arg14[%c1_84] : memref<4xf32, #tpu.memory_space<smem>>
    %c2 = arith.constant 2 : index
    %261 = memref.load %arg14[%c2] : memref<4xf32, #tpu.memory_space<smem>>
    %262 = arith.addf %261, %254 : f32
    %c2_85 = arith.constant 2 : index
    %263 = memref.load %arg14[%c2_85] : memref<4xf32, #tpu.memory_space<smem>>
    memref.store %262, %arg14[%c2_85] : memref<4xf32, #tpu.memory_space<smem>>
    %c1_i32_86 = arith.constant 1 : i32
    %264 = arith.cmpi eq, %arg1, %c1_i32_86 : i32
    %265 = arith.extui %264 : i1 to i32
    %c0_i32_87 = arith.constant 0 : i32
    %266 = arith.cmpi ne, %265, %c0_i32_87 : i32
    scf.if %266 {
      %267 = tpu.iota {dimensions = array<i32: 1>} : vector<1x3x128xi32>
      %c0_i32_88 = arith.constant 0 : i32
      %268 = vector.broadcast %c0_i32_88 : i32 to vector<1x3x128xi32>
      %269 = arith.cmpi eq, %267, %268 : vector<1x3x128xi32>
      %c0_89 = arith.constant 0 : index
      %270 = memref.load %arg14[%c0_89] : memref<4xf32, #tpu.memory_space<smem>>
      %c1_i32_90 = arith.constant 1 : i32
      %271 = vector.broadcast %c1_i32_90 : i32 to vector<1x3x128xi32>
      %272 = arith.cmpi eq, %267, %271 : vector<1x3x128xi32>
      %c1_91 = arith.constant 1 : index
      %273 = memref.load %arg14[%c1_91] : memref<4xf32, #tpu.memory_space<smem>>
      %c2_92 = arith.constant 2 : index
      %274 = memref.load %arg14[%c2_92] : memref<4xf32, #tpu.memory_space<smem>>
      %275 = vector.broadcast %273 : f32 to vector<1x3x128xf32>
      %276 = vector.broadcast %274 : f32 to vector<1x3x128xf32>
      %277 = arith.select %272, %275, %276 : vector<1x3x128xi1>, vector<1x3x128xf32>
      %278 = vector.broadcast %270 : f32 to vector<1x3x128xf32>
      %279 = arith.select %269, %278, %277 : vector<1x3x128xi1>, vector<1x3x128xf32>
      %c0_93 = arith.constant 0 : index
      %c0_94 = arith.constant 0 : index
      %c0_95 = arith.constant 0 : index
      %280 = vector.load %arg12[%c0_93, %c0_94, %c0_95] : memref<1x3x128xf32, #tpu.memory_space<vmem>>, vector<1x3x128xf32>
      tpu.vector_store %arg12[%c0_93, %c0_94, %c0_95], %279 {strides = array<i32>} : memref<1x3x128xf32, #tpu.memory_space<vmem>>, vector<1x3x128xf32>,
    } else {
    }
    return
  }
  func.func @transform_0(%arg0: i32, %arg1: i32) -> (i32, i32, i32, i32) {
    %c1_i32 = arith.constant 1 : i32
    %0 = arith.addi %arg1, %c1_i32 : i32
    %c0_i32 = arith.constant 0 : i32
    %c0_i32_0 = arith.constant 0 : i32
    %c0_i32_1 = arith.constant 0 : i32
    return %arg0, %0, %c0_i32, %c0_i32_0 : i32, i32, i32, i32
  }
  func.func @transform_1(%arg0: i32, %arg1: i32) -> (i32, i32, i32, i32) {
    %c1_i32 = arith.constant 1 : i32
    %0 = arith.addi %arg1, %c1_i32 : i32
    %c0_i32 = arith.constant 0 : i32
    %c0_i32_0 = arith.constant 0 : i32
    %c0_i32_1 = arith.constant 0 : i32
    return %arg0, %0, %c0_i32, %c0_i32_0 : i32, i32, i32, i32
  }
  func.func @transform_2(%arg0: i32, %arg1: i32) -> (i32, i32, i32, i32) {
    %c0_i32 = arith.constant 0 : i32
    %c0_i32_0 = arith.constant 0 : i32
    %c0_i32_1 = arith.constant 0 : i32
    return %arg0, %arg1, %c0_i32, %c0_i32_0 : i32, i32, i32, i32
  }
  func.func @transform_3(%arg0: i32, %arg1: i32) -> (i32, i32, i32) {
    %c0_i32 = arith.constant 0 : i32
    %c0_i32_0 = arith.constant 0 : i32
    %c0_i32_1 = arith.constant 0 : i32
    return %arg0, %c0_i32, %c0_i32_0 : i32, i32, i32
  }
  func.func @transform_4(%arg0: i32, %arg1: i32) -> (i32, i32) {
    %c0_i32 = arith.constant 0 : i32
    %c0_i32_0 = arith.constant 0 : i32
    %c0_i32_1 = arith.constant 0 : i32
    return %c0_i32, %c0_i32_0 : i32, i32
  }
  func.func @transform_5(%arg0: i32, %arg1: i32) -> (i32, i32) {
    %c0_i32 = arith.constant 0 : i32
    %c0_i32_0 = arith.constant 0 : i32
    %c0_i32_1 = arith.constant 0 : i32
    return %c0_i32, %c0_i32_0 : i32, i32
  }
  func.func @transform_6(%arg0: i32, %arg1: i32) -> (i32, i32) {
    %c0_i32 = arith.constant 0 : i32
    %c0_i32_0 = arith.constant 0 : i32
    %c0_i32_1 = arith.constant 0 : i32
    return %c0_i32, %c0_i32_0 : i32, i32
  }
  func.func @transform_7(%arg0: i32, %arg1: i32) -> (i32, i32) {
    %c0_i32 = arith.constant 0 : i32
    %c0_i32_0 = arith.constant 0 : i32
    %c0_i32_1 = arith.constant 0 : i32
    return %c0_i32, %c0_i32_0 : i32, i32
  }
  func.func @transform_8(%arg0: i32, %arg1: i32) -> (i32, i32) {
    %c0_i32 = arith.constant 0 : i32
    %c0_i32_0 = arith.constant 0 : i32
    %c0_i32_1 = arith.constant 0 : i32
    return %c0_i32, %c0_i32_0 : i32, i32
  }
  func.func @transform_9(%arg0: i32, %arg1: i32) -> (i32, i32) {
    %c0_i32 = arith.constant 0 : i32
    %c0_i32_0 = arith.constant 0 : i32
    %c0_i32_1 = arith.constant 0 : i32
    return %c0_i32, %c0_i32_0 : i32, i32
  }
  func.func @transform_10(%arg0: i32, %arg1: i32) -> (i32, i32, i32) {
    %c0_i32 = arith.constant 0 : i32
    %c0_i32_0 = arith.constant 0 : i32
    %c0_i32_1 = arith.constant 0 : i32
    return %arg0, %c0_i32, %c0_i32_0 : i32, i32, i32
  }
}

</mosaic_0001>

<bundles_post_ra>
// kernel: vae_val_forward.1
= control target key start
LH: loop header
LB: loop body
LE: loop exit
PB: predicated region body
PF: predicated region fallthrough
CT: control target
= control target key end

     0   :  { %s2369_s13 = smov 0   ;;  %s2371_s14 = smov 0   ;;  %s3820_s0 = inlined_call_operand.vmem [shape: f32[2,3,8,256], index: 0, kind: input, shape index: {}]   ;;  %s3821_s1 = inlined_call_operand.vmem [shape: f32[2,3,8,256], index: 1, kind: input, shape index: {}]   ;;  %s3822_s2 = inlined_call_operand.vmem [shape: f32[2,2,8,256], index: 2, kind: input, shape index: {}]   ;;  %s3823_s3 = inlined_call_operand.vmem [shape: f32[2,8,256], index: 3, kind: input, shape index: {}]   ;;  %s3824_s4 = inlined_call_operand.vmem [shape: f32[9,512], index: 4, kind: input, shape index: {}]   ;;  %s3825_s5 = inlined_call_operand.vmem [shape: bf16[16,73], index: 5, kind: input, shape index: {}]   ;;  %s3826_s6 = inlined_call_operand.vmem [shape: bf16[8,73], index: 6, kind: input, shape index: {}]   ;;  %s3827_s7 = inlined_call_operand.vmem [shape: bf16[16,217], index: 7, kind: input, shape index: {}]   ;;  %s3828_s8 = inlined_call_operand.vmem [shape: bf16[16,289], index: 8, kind: input, shape index: {}]   ;;  %s3829_s9 = inlined_call_operand.vmem [shape: bf16[8,145], index: 9, kind: input, shape index: {}]   ;;  %s3830_s10 = inlined_call_operand.vmem [shape: f32[2,3,128], index: 10, kind: output, shape index: {}]  }
   0x1   :  { %s2373_s15 = smov 0   ;;  %s2375_s16 = smov 0  }
   0x2   :  { %s2377_s17 = smov 0  }
   0x3 LB: > { %3844 = sst [smem:[#allocation4_spill]] %s2291_s15  ;;  %s29_s18 = sadd.s32 1, %s2291_s15  ;;  %s2299_s17 = sphi %s2377_s17, %s20_s17   ;;  %s2295_s16 = sphi %s2375_s16, %s3861_s16   ;;  %s2291_s15 = sphi %s2373_s15, %s3860_s15   ;;  %s2287_s14 = sphi %s2371_s14, %s3859_s14   ;;  %s2283_s13 = sphi %s2369_s13, %s3858_s13  }
   0x4   : > { %3845 = sst [smem:[#allocation5_spill]] %s2295_s16  ;;  %s32_s19 = sadd.s32 1, %s2295_s16 }
   0x5   : > { %3846 = sst [smem:[#allocation6_spill]] %s2299_s17  ;;  %p30_p0 = scmp.ge.s32.totalorder %s29_s18, 2 }
   0x6   : > { %p2125_p1 = scmp.ge.s32.totalorder %s2299_s17, 1  ;;  %p380_p2 = scmp.lt.s32.totalorder %s2299_s17, 5 }
   0x7   : > { %s3863_s18 = smov (%p30_p0, %s29_s18), 0  ;;  %s3865_s19 = smov (!%p30_p0, %s32_s19), %s2295_s16 }
   0x8   : > { %3847 = sst [smem:[#allocation7_spill]] %s3863_s18  ;;  %p381_p3 = pnand %p2125_p1, %p380_p2 }
   0x9   : > { %p34_p4 = scmp.ge.s32.totalorder %s3865_s19, 2 }
   0xa   : > { %384 = sbr.rel (%p381_p3) target bundleno = 2157 (0x86d), region = 60 }
   0xb   : > { %s3867_s19 = smov (%p34_p4, %s3865_s19), 0 }
   0xc   : > { %3848 = sst [smem:[#allocation8_spill]] %s3867_s19 }
  0x11   : > { %s446_s20 = sadd.s32 1, %s2283_s13  ;;  %p447_p5 = scmp.lt.s32.totalorder %s2287_s14, 1 }
  0x12   : > { %p449_p6 = scmp.lt.s32.totalorder %s446_s20, 2  ;;  %p470_p7 = scmp.lt.s32.totalorder %s2283_s13, 1 }
  0x13   : > { %s3869_s14 = smov (!%p447_p5, %s2287_s14), 1  ;;  %p2136_p8 = scmp.ne.s32.totalorder %s2283_s13, 0 }
  0x14   : > { %s3871_s20 = smov (!%p449_p6, %s446_s20), 2  ;;  %s2169_s21 = smul.u32 6, %s3869_s14 }
  0x15   : > { %s2131_s22 = sshll.u32 %s3869_s14, 2  ;;  %s2126_s23 = sshll.u32 %s3871_s20, 1 }
  0x16   : > { %s2164_s24 = sshll.u32 %s3869_s14, 4  ;;  %s453_s25 = sadd.s32 %s2169_s21, %s2126_s23 }
  0x17   : > { %s481_s28 = scalar_lea.vmem %s3823_s3, %s2164_s24  ;;  %s2127_s29 = sshll.u32 %s453_s25, 3 }
  0x18   : > { %s2409_s12 = scalar_lea.vmem %s3830_s10, %s2131_s22  ;;  %s2414_s16 = scalar_lea.vmem %s3820_s0, %s2127_s29  ;;  %v491_v0 = vld [vmem:[%s481_s28] sm:$0xff] (!%p2136_p8)  ;;  %v492_v1 = vld [vmem:[%s481_s28 + $0x8] sm:$0xff] (!%p2136_p8) }
  0x19   : > { %s2419_s14 = scalar_lea.vmem %s3821_s1, %s2127_s29  ;;  %490 = sbr.rel (%p2136_p8) target bundleno = 32 (0x20), region = 64  ;;  %493 = vst [vmem:[#allocation2] sm:$0xff] (!%p2136_p8), %v491_v0  ;;  %494 = vst [vmem:[#allocation2 + $0x8] sm:$0xff] (!%p2136_p8), %v492_v1 }
  0x1a   : > { %s471_s20 = scalar_select %p470_p7, %s2283_s13, 1 }
  0x1b   : > { %s2301_s18 = smov (!%p2136_p8), 0.0  }
  0x1c   : > { %s2130_s21 = sshll.u32 %s471_s20, 1  ;;  %496 = sst [smem:[#allocation3]] (!%p2136_p8), %s2301_s18 }
  0x1d   : > { %s474_s23 = sadd.s32 %s2131_s22, %s2130_s21  ;;  %498 = sst [smem:[#allocation3 + $0x1]] (!%p2136_p8), %s2301_s18 }
  0x1e   : > { %s2132_s24 = sshll.u32 %s474_s23, 3  ;;  %500 = sst [smem:[#allocation3 + $0x2]] (!%p2136_p8), %s2301_s18 }
  0x1f   : > { %s2425_s27 = scalar_lea.vmem %s3822_s2, %s2132_s24 }
  0x20 PF: > { %v2429_v2 = vld [vmem:[%s2414_s16] sm:$0xff]  ;;  %s2302_s15 = smov 16   ;;  %s2303_s17 = smov 17   ;;  %v2436_v3 = vld [vmem:[%s2414_s16 + $0x8] sm:$0xff]  ;;  %v3834_v6 = vmov 0   ;;  %v525_v9 = vlaneseq  ;;  %vm814_vm7 = vcmask 1043456  }
  0x21   : > { %552 = vrot.lane.b32.xlu1 %v2429_v2, %s2302_s15  ;;  %517 = vrot.lane.b32.xlu0 %v2429_v2, %s2303_s17  ;;  %v2442_v4 = vld [vmem:[#allocation2 + $0x8] sm:$0xff]  ;;  %s2304_s19 = smov 15   ;;  %s2305_s22 = smov 1   ;;  %v2460_v5 = vld [vmem:[#allocation2] sm:$0xff]  ;;  %vm815_vm9 = vcmask 1044480   ;;  %vm810_vm10 = vcmask 596992  }
  0x22   : > { %s2306_s28 = smov 127   ;;  %s2307_s29 = smov 113   ;;  %862 = vmatprep.mubr.bf16.mxu0 %v3834_v6  ;;  %905 = vmatprep.mubr.bf16.mxu1 %v3834_v6  ;;  %v2489_v7 = vld [vmem:[%s2419_s14 + $0x8] sm:$0xff]  ;;  %v2492_v8 = vld [vmem:[%s2419_s14] sm:$0xff]  ;;  %v2542_v10 = vshrl.u32 %v525_v9, 7  ;;  %v2544_v11 = vand.u32 127, %v525_v9 }
  0x23   : > { %s2308_s30 = smov 112   ;;  %s2309_s11 = smov 111   ;;  %v2555_v14 = vld [vmem:[%s3824_s4 + $0x8] sm:$0xff]  ;;  %v2570_v19 = vld [vmem:[%s3824_s4] sm:$0xff]  ;;  %vm1282_vm11 = vcmask 728064   ;;  %vm1597_vm12 = vcmask 1040384  }
  0x24   : > { %3849 = vst [vmem:[#allocation9_spill] sm:$0xff] %v2542_v10  ;;  %v2547_v12 = vsub.s32 0, %v2542_v10  ;;  %v2550_v13 = vsub.s32 1, %v2542_v10  ;;  %vm560_vm0 = vcmp.lt.s32.totalorder %v2544_v11, 16  ;;  %vm527_vm1 = vcmp.lt.s32.totalorder %v2544_v11, 17  ;;  %s2158_s24 = sld [smem:[#allocation3 + $0x2]] }
  0x25   : > { %554 = vrot.lane.b32.xlu1 %v2436_v3, %s2302_s15  ;;  %519 = vrot.lane.b32.xlu0 %v2436_v3, %s2303_s17  ;;  %v2603_v33 = vsub.s32 2, %v2542_v10  ;;  %v2608_v36 = vsub.s32 3, %v2542_v10  ;;  %vm593_vm2 = vcmp.lt.s32.totalorder %v2544_v11, 15  ;;  %vm626_vm3 = vcmp.lt.s32.totalorder %v2544_v11, 1  ;;  %p2159_p9 = scmp.ne.s32.totalorder %s2283_s13, 1 }
  0x26   : > { %v2561_v17 = vrot.slane %v2555_v14, %v2547_v12  ;;  %v2565_v18 = vrot.slane %v2555_v14, %v2550_v13  ;;  %v2586_v26 = vrot.slane %v2570_v19, %v2547_v12  ;;  %v2590_v27 = vrot.slane %v2570_v19, %v2550_v13 }
  0x27   : > { %v2615_v40 = vrot.slane %v2555_v14, %v2603_v33  ;;  %v2620_v41 = vrot.slane %v2555_v14, %v2608_v36  ;;  %v2632_v46 = vrot.slane %v2570_v19, %v2608_v36  ;;  %v2638_v49 = vrot.slane %v2570_v19, %v2603_v33 }
  0x28   : > { %v2641_v50 = vsub.s32 5, %v2542_v10  ;;  %vm659_vm4 = vcmp.lt.s32.totalorder %v2544_v11, 127  ;;  %vm692_vm5 = vcmp.lt.s32.totalorder %v2544_v11, 113  ;;  %vm725_vm6 = vcmp.lt.s32.totalorder %v2544_v11, 112 }
  0x29   : > { %558 = vrot.lane.b32.xlu1 %v2442_v4, %s2302_s15  ;;  %523 = vrot.lane.b32.xlu0 %v2442_v4, %s2303_s17  ;;  %vm758_vm8 = vcmp.lt.s32.totalorder %v2544_v11, 111  ;;  %vm1593_vm13 = vcmask 269312   ;;  %vm1846_vm14 = vcmask 138240   ;;  %vm1933_vm15 = vcmask 1042432  }
  0x2a   : > { %v2658_v58 = vrot.slane %v2555_v14, %v2641_v50  ;;  %v2668_v0 = vrot.slane %v2570_v19, %v2641_v50 }
  0x2d   : > { %587 = vrot.lane.b32.xlu1 %v2436_v3, %s2304_s19  ;;  %585 = vrot.lane.b32.xlu0 %v2429_v2, %s2304_s19 }
  0x31   : > { %620 = vrot.lane.b32.xlu1 %v2436_v3, %s2305_s22  ;;  %618 = vrot.lane.b32.xlu0 %v2429_v2, %s2305_s22 }
  0x35   : > { %624 = vrot.lane.b32.xlu1 %v2442_v4, %s2305_s22  ;;  %591 = vrot.lane.b32.xlu0 %v2442_v4, %s2304_s19 }
  0x39   : > { %655 = vrot.lane.b32.xlu1 %v2460_v5, %s2306_s28  ;;  %653 = vrot.lane.b32.xlu0 %v2436_v3, %s2306_s28 }
  0x3d   : > { %686 = vrot.lane.b32.xlu1 %v2436_v3, %s2307_s29  ;;  %651 = vrot.lane.b32.xlu0 %v2429_v2, %s2306_s28 }
  0x41   : > { %719 = vrot.lane.b32.xlu1 %v2436_v3, %s2308_s30  ;;  %688 = vrot.lane.b32.xlu0 %v2460_v5, %s2307_s29 }
  0x45   : > { %684 = vrot.lane.b32.xlu1 %v2429_v2, %s2307_s29  ;;  %721 = vrot.lane.b32.xlu0 %v2460_v5, %s2308_s30 }
  0x49   : > { %752 = vrot.lane.b32.xlu1 %v2436_v3, %s2309_s11  ;;  %717 = vrot.lane.b32.xlu0 %v2429_v2, %s2308_s30 }
  0x4d   : > { %750 = vrot.lane.b32.xlu1 %v2429_v2, %s2309_s11  ;;  %754 = vrot.lane.b32.xlu0 %v2460_v5, %s2309_s11 }
  0x51   : > { %926 = vrot.lane.b32.xlu1 %v2489_v7, %s2303_s17  ;;  %924 = vrot.lane.b32.xlu0 %v2492_v8, %s2303_s17 }
  0x55   : > { %934 = vrot.lane.b32.xlu1 %v2489_v7, %s2302_s15  ;;  %932 = vrot.lane.b32.xlu0 %v2492_v8, %s2302_s15 }
  0x59   : > { %942 = vrot.lane.b32.xlu1 %v2489_v7, %s2304_s19  ;;  %940 = vrot.lane.b32.xlu0 %v2492_v8, %s2304_s19 }
  0x5d   : > { %950 = vrot.lane.b32.xlu1 %v2489_v7, %s2305_s22  ;;  %948 = vrot.lane.b32.xlu0 %v2492_v8, %s2305_s22 }
  0x61   : > { %958 = vrot.lane.b32.xlu1 %v2489_v7, %s2306_s28  ;;  %956 = vrot.lane.b32.xlu0 %v2492_v8, %s2306_s28 }
  0x65   : > { %966 = vrot.lane.b32.xlu1 %v2489_v7, %s2307_s29  ;;  %964 = vrot.lane.b32.xlu0 %v2492_v8, %s2307_s29 }
  0x69   : > { %974 = vrot.lane.b32.xlu1 %v2489_v7, %s2308_s30  ;;  %972 = vrot.lane.b32.xlu0 %v2492_v8, %s2308_s30 }
  0x6d   : > { %982 = vrot.lane.b32.xlu1 %v2489_v7, %s2309_s11  ;;  %980 = vrot.lane.b32.xlu0 %v2492_v8, %s2309_s11 }
  0x71   : > { %556 = vrot.lane.b32.xlu1 %v2460_v5, %s2302_s15  ;;  %521 = vrot.lane.b32.xlu0 %v2460_v5, %s2303_s17 }
  0x75   : > { %622 = vrot.lane.b32.xlu1 %v2460_v5, %s2305_s22  ;;  %589 = vrot.lane.b32.xlu0 %v2460_v5, %s2304_s19 }
  0x79   : > { %690 = vrot.lane.b32.xlu1 %v2442_v4, %s2307_s29  ;;  %657 = vrot.lane.b32.xlu0 %v2442_v4, %s2306_s28 }
  0x7d   : > { %756 = vrot.lane.b32.xlu1 %v2442_v4, %s2309_s11  ;;  %723 = vrot.lane.b32.xlu0 %v2442_v4, %s2308_s30 }
  0x93   : > { %v553_v15 = vpop.permute.xlu1 %552  ;;  %v518_v16 = vpop.permute.xlu0 %517 }
  0x97   : > { %v2572_v20 = vpop.permute.xlu1 %554  ;;  %v2574_v21 = vpop.permute.xlu0 %519 }
  0x98   : > { %v530_v22 = vsel %vm527_vm1, %v518_v16, %v2574_v21  ;;  %v563_v23 = vsel %vm560_vm0, %v553_v15, %v2572_v20 }
  0x99   : > { %v549_v24 = vmul.f32 %v2561_v17, %v530_v22  ;;  %v582_v25 = vmul.f32 %v2565_v18, %v563_v23  ;;  %v2678_v23 = vsub.s32 6, %v2542_v10 }
  0x9b   : > { %v2592_v28 = vpop.permute.xlu1 %558  ;;  %v2594_v29 = vpop.permute.xlu0 %523  ;;  %v784_v30 = vpack.c.bf16 %v582_v25, %v549_v24  ;;  %v2681_v24 = vsub.s32 7, %v2542_v10 }
  0x9c   : > { %v564_v31 = vsel %vm560_vm0, %v2592_v28, %v553_v15  ;;  %v531_v32 = vsel %vm527_vm1, %v2594_v29, %v518_v16 }
  0x9d   : > { %830 = vmatprep.subr.bf16.mxu0 %v784_v30  ;;  %v548_v34 = vmul.f32 %v2586_v26, %v531_v32  ;;  %v581_v35 = vmul.f32 %v2590_v27, %v564_v31  ;;  %v2689_v31 = vrot.slane %v2555_v14, %v2678_v23  ;;  %v2694_v32 = vrot.slane %v2555_v14, %v2681_v24 }
  0x9f   : > { %v2610_v37 = vpop.permute.xlu1 %587  ;;  %v586_v38 = vpop.permute.xlu0 %585  ;;  %v783_v39 = vpack.c.bf16 %v581_v35, %v548_v34 }
  0xa0   : > { %v596_v42 = vsel %vm593_vm2, %v586_v38, %v2610_v37 }
  0xa1   : > { %831 = vmatpush1.bf16.msra.mxu0 %v783_v39  ;;  %v615_v47 = vmul.f32 %v2615_v40, %v596_v42  ;;  %v2709_v42 = vrot.slane %v2570_v19, %v2678_v23 }
  0xa3   : > { %v2625_v43 = vpop.permute.xlu1 %620  ;;  %v619_v44 = vpop.permute.xlu0 %618 }
  0xa4   : > { %v629_v45 = vsel %vm626_vm3, %v619_v44, %v2625_v43 }
  0xa5   : > { %v648_v48 = vmul.f32 %v2620_v41, %v629_v45 }
  0xa7   : > { %v2643_v51 = vpop.permute.xlu1 %624  ;;  %v2645_v52 = vpop.permute.xlu0 %591  ;;  %v788_v53 = vpack.c.bf16 %v648_v48, %v615_v47 }
  0xa8   : > { %v630_v54 = vsel %vm626_vm3, %v2643_v51, %v619_v44  ;;  %v597_v55 = vsel %vm593_vm2, %v2645_v52, %v586_v38  ;;  %v2714_v44 = vrot.slane %v2570_v19, %v2681_v24  ;;  %v2730_v19 = vld [vmem:[%s3824_s4 + $0x20] ss:$0 sm:$0xff] }
  0xa9   : > { %v647_v56 = vmul.f32 %v2632_v46, %v630_v54  ;;  %v614_v57 = vmul.f32 %v2638_v49, %v597_v55  ;;  %832 = vmatprep.subr.bf16.mxu0 %v788_v53  ;;  %3850 = vst [vmem:[#allocation10_spill] sm:$0xff] %v2730_v19 }
  0xab   : > { %v2660_v59 = vpop.permute.xlu1 %655  ;;  %v654_v60 = vpop.permute.xlu0 %653  ;;  %v787_v61 = vpack.c.bf16 %v647_v56, %v614_v57  ;;  %v2735_v57 = vld [vmem:[%s3824_s4 + $0x28] ss:$0 sm:$0xff] }
  0xac   : > { %v661_v62 = vsel %vm659_vm4, %v654_v60, %v2660_v59  ;;  %3851 = vst [vmem:[#allocation11_spill] sm:$0xff] %v2735_v57 }
  0xad   : > { %v681_v63 = vmul.f32 %v2658_v58, %v661_v62  ;;  %833 = vmatpush1.bf16.msra.mxu0 %v787_v61 }
  0xaf   : > { %v687_v1 = vpop.permute.xlu1 %686  ;;  %v2670_v9 = vpop.permute.xlu0 %651  ;;  %v792_v15 = vpack.c.bf16 %v681_v63, %v2436_v3  ;;  %v2311_v63 = vmov 65535  }
  0xb0   : > { %v662_v16 = vsel %vm659_vm4, %v2670_v9, %v654_v60 }
  0xb1   : > { %v680_v22 = vmul.f32 %v2668_v0, %v662_v16  ;;  %834 = vmatprep.subr.bf16.mxu0 %v792_v15 }
  0xb3   : > { %v720_v25 = vpop.permute.xlu1 %719  ;;  %v2684_v30 = vpop.permute.xlu0 %688  ;;  %v791_v3 = vpack.c.bf16 %v680_v22, %v2429_v2 }
  0xb4   : > { %v694_v34 = vsel %vm692_vm5, %v687_v1, %v2684_v30 }
  0xb5   : > { %835 = vmatpush1.bf16.msra.mxu0 %v791_v3  ;;  %v714_v39 = vmul.f32 %v2689_v31, %v694_v34 }
  0xb7   : > { %v2699_v35 = vpop.permute.xlu1 %684  ;;  %v2701_v38 = vpop.permute.xlu0 %721 }
  0xb8   : > { %v727_v2 = vsel %vm725_vm6, %v720_v25, %v2701_v38  ;;  %v695_v45 = vsel %vm692_vm5, %v2699_v35, %v687_v1  ;;  %v816_v1 = vsel %vm814_vm7, 4294967295, %v2311_v63  ;;  %v2762_v63 = vld [vmem:[%s3825_s5] sm:$0xff]  }
  0xb9   : > { %v747_v14 = vmul.f32 %v2694_v32, %v727_v2  ;;  %v713_v55 = vmul.f32 %v2709_v42, %v695_v45  ;;  %v2749_v3 = vsel %vm815_vm9, %v816_v1, 0 }
  0xbb   : > { %v753_v47 = vpop.permute.xlu1 %752  ;;  %v2719_v48 = vpop.permute.xlu0 %717  ;;  %v796_v53 = vpack.c.bf16 %v747_v14, %v714_v39  ;;  %v3836_v39 = vmov 1.0  }
  0xbc   : > { %v728_v54 = vsel %vm725_vm6, %v2719_v48, %v720_v25 }
  0xbd   : > { %v746_v56 = vmul.f32 %v2714_v44, %v728_v54  ;;  %836 = vmatprep.subr.bf16.mxu0 %v796_v53 }
  0xbf   : > { %v2737_v60 = vpop.permute.xlu1 %750  ;;  %v2739_v61 = vpop.permute.xlu0 %754  ;;  %v795_v62 = vpack.c.bf16 %v746_v56, %v713_v55 }
  0xc0   : > { %v761_v15 = vsel %vm758_vm8, %v2737_v60, %v753_v47  ;;  %v760_v16 = vsel %vm758_vm8, %v753_v47, %v2739_v61 }
  0xc1   : > { %v779_v22 = vmul.f32 %v2730_v19, %v761_v15  ;;  %v780_v25 = vmul.f32 %v2735_v57, %v760_v16  ;;  %837 = vmatpush1.bf16.msra.mxu0 %v795_v62 }
  0xc3   : > { %v927_v34 = vpop.permute.xlu1 %926  ;;  %v925_v2 = vpop.permute.xlu0 %924  ;;  %v800_v14 = vpack.c.bf16 %v3836_v39, %v780_v25  ;;  %v799_v45 = vpack.c.bf16 %v3836_v39, %v779_v22 }
  0xc4   : > { %v928_v47 = vsel %vm527_vm1, %v925_v2, %v927_v34  ;;  %v929_v55 = vsel %vm527_vm1, %v927_v34, %v925_v2 }
  0xc5   : > { %v822_v53 = vand.u32 %v2749_v3, %v800_v14  ;;  %v819_v54 = vand.u32 %v2749_v3, %v799_v45  ;;  %v930_v16 = vmul.f32 %v929_v55, %v2586_v26  ;;  %v931_v22 = vmul.f32 %v928_v47, %v2561_v17 }
  0xc7   : > { %v935_v56 = vpop.permute.xlu1 %934  ;;  %v933_v62 = vpop.permute.xlu0 %932  ;;  %838 = vmatprep.subr.bf16.mxu0 %v822_v53 }
  0xc8   : > { %v936_v1 = vsel %vm560_vm0, %v933_v62, %v935_v56  ;;  %v937_v15 = vsel %vm560_vm0, %v935_v56, %v933_v62  ;;  %839 = vmatpush1.bf16.msra.mxu0 %v819_v54 }
  0xc9   : > { %v938_v25 = vmul.f32 %v937_v15, %v2590_v27  ;;  %v939_v34 = vmul.f32 %v936_v1, %v2565_v18 }
  0xcb   : > { %v988_v2 = vpack.c.bf16 %v938_v25, %v930_v16  ;;  %v943_v14 = vpop.permute.xlu1 %942  ;;  %v941_v45 = vpop.permute.xlu0 %940  ;;  %2142 = vmatmul.mubr.msk.bf16.vlgmr.msra.gmra.mrb[0].mxu0 %vm810_vm10, %v2762_v63  ;;  %v989_v53 = vpack.c.bf16 %v939_v34, %v931_v22 }
  0xcc   : > { %1040 = vmatprep.mubr.bf16.mxu0 %v3834_v6  ;;  %v944_v54 = vsel %vm593_vm2, %v941_v45, %v943_v14  ;;  %v945_v47 = vsel %vm593_vm2, %v943_v14, %v941_v45 }
  0xcd   : > { %1008 = vmatprep.subr.bf16.mxu0 %v989_v53  ;;  %v946_v15 = vmul.f32 %v945_v47, %v2638_v49  ;;  %v947_v16 = vmul.f32 %v944_v54, %v2615_v40 }
  0xce   : > { %1009 = vmatpush1.bf16.msra.mxu0 %v988_v2 }
  0xcf   : > { %v951_v55 = vpop.permute.xlu1 %950  ;;  %v949_v56 = vpop.permute.xlu0 %948 }
  0xd0   : > { %v952_v62 = vsel %vm626_vm3, %v949_v56, %v951_v55  ;;  %v953_v1 = vsel %vm626_vm3, %v951_v55, %v949_v56 }
  0xd1   : > { %v954_v22 = vmul.f32 %v953_v1, %v2632_v46  ;;  %v955_v25 = vmul.f32 %v952_v62, %v2620_v41 }
  0xd3   : > { %v990_v34 = vpack.c.bf16 %v954_v22, %v946_v15  ;;  %v959_v53 = vpop.permute.xlu1 %958  ;;  %v957_v14 = vpop.permute.xlu0 %956  ;;  %v991_v2 = vpack.c.bf16 %v955_v25, %v947_v16 }
  0xd4   : > { %v960_v45 = vsel %vm659_vm4, %v957_v14, %v959_v53  ;;  %v961_v6 = vsel %vm659_vm4, %v959_v53, %v957_v14 }
  0xd5   : > { %v962_v55 = vmul.f32 %v960_v45, %v2668_v0  ;;  %v963_v47 = vmul.f32 %v961_v6, %v2658_v58  ;;  %1010 = vmatprep.subr.bf16.mxu0 %v991_v2  ;;  %v2810_v2 = vld [vmem:[%s3824_s4 + $0x18] sm:$0xff] }
  0xd6   : > { %1011 = vmatpush1.bf16.msra.mxu0 %v990_v34 }
  0xd7   : > { %v992_v54 = vpack.c.bf16 %v962_v55, %v2492_v8  ;;  %v967_v56 = vpop.permute.xlu1 %966  ;;  %v965_v62 = vpop.permute.xlu0 %964  ;;  %v993_v1 = vpack.c.bf16 %v963_v47, %v2489_v7 }
  0xd8   : > { %v968_v15 = vsel %vm692_vm5, %v965_v62, %v967_v56  ;;  %v969_v16 = vsel %vm692_vm5, %v967_v56, %v965_v62  ;;  %v2815_v56 = vld [vmem:[%s3824_s4 + $0x10] sm:$0xff] }
  0xd9   : > { %1012 = vmatprep.subr.bf16.mxu0 %v993_v1  ;;  %v970_v34 = vmul.f32 %v968_v15, %v2709_v42  ;;  %v971_v7 = vmul.f32 %v969_v16, %v2689_v31 }
  0xda   : > { %1013 = vmatpush1.bf16.msra.mxu0 %v992_v54 }
  0xdb   : > { %v975_v22 = vpop.permute.xlu1 %974  ;;  %v973_v25 = vpop.permute.xlu0 %972 }
  0xdc   : > { %v976_v6 = vsel %vm725_vm6, %v973_v25, %v975_v22  ;;  %v977_v8 = vsel %vm725_vm6, %v975_v22, %v973_v25  ;;  %v547_v22 = vrot.slane %v2810_v2, %v2547_v12  ;;  %v580_v25 = vrot.slane %v2810_v2, %v2550_v13 }
  0xdd   : > { %v978_v53 = vmul.f32 %v976_v6, %v2714_v44  ;;  %v979_v14 = vmul.f32 %v977_v8, %v2694_v32  ;;  %v642_v6 = vrot.slane %v2815_v56, %v2608_v36  ;;  %v646_v8 = vrot.slane %v2810_v2, %v2608_v36 }
  0xdf   : > { %v994_v45 = vpack.c.bf16 %v978_v53, %v970_v34  ;;  %v983_v55 = vpop.permute.xlu1 %982  ;;  %v981_v47 = vpop.permute.xlu0 %980  ;;  %v995_v54 = vpack.c.bf16 %v979_v14, %v971_v7  ;;  %v543_v34 = vrot.slane %v2815_v56, %v2547_v12  ;;  %v576_v7 = vrot.slane %v2815_v56, %v2550_v13 }
  0xe0   : > { %v984_v62 = vsel %vm758_vm8, %v981_v47, %v983_v55  ;;  %v985_v1 = vsel %vm758_vm8, %v983_v55, %v981_v47  ;;  %v609_v47 = vrot.slane %v2815_v56, %v2603_v33 }
  0xe1   : > { %v986_v15 = vmul.f32 %v2730_v19, %v984_v62  ;;  %v987_v16 = vmul.f32 %v2735_v57, %v985_v1  ;;  %1014 = vmatprep.subr.bf16.mxu0 %v995_v54  ;;  %v675_v19 = vrot.slane %v2815_v56, %v2641_v50 }
  0xe2   : > { %1015 = vmatpush1.bf16.msra.mxu0 %v994_v45  ;;  %v613_v45 = vrot.slane %v2810_v2, %v2603_v33 }
  0xe3   : > { %v996_v53 = vpack.c.bf16 %v3836_v39, %v986_v15  ;;  %v557_v14 = vpop.permute.xlu1 %556  ;;  %v522_v55 = vpop.permute.xlu0 %521  ;;  %v997_v54 = vpack.c.bf16 %v3836_v39, %v987_v16 }
  0xe4   : > { %v562_v36 = vsel %vm560_vm0, %v2572_v20, %v557_v14  ;;  %v529_v12 = vsel %vm527_vm1, %v2574_v21, %v522_v55  ;;  %v528_v13 = vsel %vm527_vm1, %v522_v55, %v2594_v29  ;;  %v561_v62 = vsel %vm560_vm0, %v557_v14, %v2592_v28 }
  0xe5   : > { %v1006_v33 = vand.u32 %v997_v54, %v2749_v3  ;;  %v1003_v1 = vand.u32 %v996_v53, %v2749_v3  ;;  %v551_v15 = vmul.f32 %v547_v22, %v528_v13  ;;  %v584_v16 = vmul.f32 %v580_v25, %v561_v62 }
  0xe6   : > { %v550_v39 = vmul.f32 %v543_v34, %v529_v12  ;;  %v583_v20 = vmul.f32 %v576_v7, %v562_v36  ;;  %v679_v29 = vrot.slane %v2810_v2, %v2641_v50  ;;  %v998_v50 = vld [vmem:[%s3826_s6] sm:$0xf] }
  0xe7   : > { %v623_v10 = vpop.permute.xlu1 %622  ;;  %v590_v57 = vpop.permute.xlu0 %589  ;;  %1016 = vmatprep.subr.bf16.mxu0 %v1006_v33  ;;  %v786_v21 = vpack.c.bf16 %v584_v16, %v551_v15 }
  0xe8   : > { %v627_v28 = vsel %vm626_vm3, %v623_v10, %v2643_v51  ;;  %v628_v22 = vsel %vm626_vm3, %v2625_v43, %v623_v10  ;;  %v594_v25 = vsel %vm593_vm2, %v590_v57, %v2645_v52  ;;  %v595_v34 = vsel %vm593_vm2, %v2610_v37, %v590_v57  ;;  %1017 = vmatpush1.bf16.msra.mxu0 %v1003_v1 }
  0xe9   : > { %v649_v7 = vmul.f32 %v642_v6, %v628_v22  ;;  %v650_v53 = vmul.f32 %v646_v8, %v627_v28  ;;  %v616_v51 = vmul.f32 %v609_v47, %v595_v34  ;;  %v617_v14 = vmul.f32 %v613_v45, %v594_v25  ;;  %873 = vmatprep.subr.bf16.mxu1 %v786_v21 }
  0xea   : > { %v785_v55 = vpack.c.bf16 %v583_v20, %v550_v39  ;;  %v712_v37 = vrot.slane %v2810_v2, %v2678_v23  ;;  %v741_v47 = vrot.slane %v2815_v56, %v2681_v24  ;;  %v745_v45 = vrot.slane %v2810_v2, %v2681_v24  ;;  %v2139_v24 = vld [vmem:[%s3824_s4 + $0x30] ss:$0 sm:$0xff] }
  0xeb   : > { %v691_v10 = vpop.permute.xlu1 %690  ;;  %v658_v43 = vpop.permute.xlu0 %657  ;;  %2144 = vmatmul.mubr.msk.bf16.vlgmr.msra.gmra.mrb[4].mxu0 %vm810_vm10, %v998_v50  ;;  %v790_v52 = vpack.c.bf16 %v650_v53, %v617_v14  ;;  %v789_v54 = vpack.c.bf16 %v649_v7, %v616_v51  ;;  %v3852_v20 = vmov 1.0  }
  0xec   : > { %874 = vmatpush1.bf16.msra.mxu1 %v785_v55  ;;  %v660_v57 = vsel %vm659_vm4, %v2660_v59, %v658_v43  ;;  %v663_v6 = vsel %vm659_vm4, %v658_v43, %v2670_v9  ;;  %v696_v36 = vsel %vm692_vm5, %v691_v10, %v2699_v35  ;;  %v708_v59 = vrot.slane %v2815_v56, %v2678_v23  ;;  %v2140_v9 = vld [vmem:[%s3824_s4 + $0x38] ss:$0 sm:$0xff] }
  0xed   : > { %v682_v8 = vmul.f32 %v675_v19, %v660_v57  ;;  %v683_v39 = vmul.f32 %v679_v29, %v663_v6  ;;  %875 = vmatprep.subr.bf16.mxu1 %v790_v52  ;;  %v693_v19 = vsel %vm692_vm5, %v2684_v30, %v691_v10 }
  0xee   : > { %v715_v15 = vmul.f32 %v708_v59, %v693_v19 }
  0xef   : > { %v757_v12 = vpop.permute.xlu1 %756  ;;  %v724_v2 = vpop.permute.xlu0 %723  ;;  %v794_v13 = vpack.c.bf16 %v683_v39, %v2442_v4  ;;  %v793_v35 = vpack.c.bf16 %v682_v8, %v2460_v5  ;;  %v716_v4 = vmul.f32 %v712_v37, %v696_v36 }
  0xf0   : > { %876 = vmatpush1.bf16.msra.mxu1 %v789_v54  ;;  %v759_v23 = vsel %vm758_vm8, %v2739_v61, %v757_v12  ;;  %v762_v56 = vsel %vm758_vm8, %v757_v12, %v2737_v60  ;;  %v726_v30 = vsel %vm725_vm6, %v2701_v38, %v724_v2  ;;  %v729_v62 = vsel %vm725_vm6, %v724_v2, %v2719_v48  ;;  %v2230_v54 = vld [vmem:[%s3827_s7 + $0x4] ss:$8 sps:$4 sm:$0xff]  }
  0xf1   : > { %v782_v33 = vmul.f32 %v2140_v9, %v762_v56  ;;  %v748_v5 = vmul.f32 %v741_v47, %v726_v30  ;;  %v749_v1 = vmul.f32 %v745_v45, %v729_v62  ;;  %877 = vmatprep.subr.bf16.mxu1 %v794_v13  ;;  %v781_v16 = vmul.f32 %v2139_v24, %v759_v23 }
  0xf3   : > { %v798_v61 = vpack.c.bf16 %v749_v1, %v716_v4  ;;  %v802_v21 = vpack.c.bf16 %v3852_v20, %v782_v33  ;;  %v797_v60 = vpack.c.bf16 %v748_v5, %v715_v15  ;;  %v801_v38 = vpack.c.bf16 %v3852_v20, %v781_v16 }
  0xf4   : > { %878 = vmatpush1.bf16.msra.mxu1 %v793_v35 }
  0xf5   : > { %879 = vmatprep.subr.bf16.mxu1 %v798_v61  ;;  %v828_v29 = vand.u32 %v2749_v3, %v802_v21  ;;  %v825_v48 = vand.u32 %v2749_v3, %v801_v38 }
  0xf8   : > { %880 = vmatpush1.bf16.msra.mxu1 %v797_v60 }
  0xf9   : > { %881 = vmatprep.subr.bf16.mxu1 %v828_v29 }
  0xfc   : > { %882 = vmatpush1.bf16.msra.mxu1 %v825_v48 }
  0xff   : > { %2143 = vmatmul.mubr.msk.bf16.vlgmr.msra.gmra.mrb[0].mxu1 %vm810_vm10, %v2762_v63 }
 0x100   : > { %2147 = vmatprep.mubr.msk.bf16.mxu1 %vm1282_vm11, %v2230_v54 }
 0x19e   : > { %v864_v28 = vpop.f32.mrb[0].mxu0 }
 0x19f   : > { %v2921_v22 = vmax.f32 %v864_v28, 0.0  ;;  %v866_v25 = vpop.f32.mrb[1].mxu0 }
 0x1a0   : > { %v2923_v34 = vmax.f32 %v866_v25, 0.0  ;;  %v868_v50 = vpop.f32.mrb[2].mxu0 }
 0x1a1   : > { %1051 = vrot.lane.b32.xlu0 %v2921_v22, %s2303_s17  ;;  %v870_v7 = vpop.f32.mrb[3].mxu0  ;;  %v2937_v63 = vmax.f32 %v868_v50, 0.0 }
 0x1a2   : > { %1081 = vrot.lane.b32.xlu1 %v2923_v34, %s2302_s15  ;;  %v2947_v53 = vmax.f32 %v870_v7, 0.0 }
 0x1a5   : > { %1075 = vrot.lane.b32.xlu0 %v2921_v22, %s2302_s15 }
 0x1a6   : > { %1129 = vrot.lane.b32.xlu1 %v2923_v34, %s2305_s22 }
 0x1a9   : > { %1099 = vrot.lane.b32.xlu0 %v2921_v22, %s2304_s19 }
 0x1aa   : > { %1153 = vrot.lane.b32.xlu1 %v2923_v34, %s2306_s28 }
 0x1ad   : > { %1123 = vrot.lane.b32.xlu0 %v2921_v22, %s2305_s22 }
 0x1ae   : > { %1053 = vrot.lane.b32.xlu1 %v2937_v63, %s2303_s17 }
 0x1b1   : > { %1147 = vrot.lane.b32.xlu0 %v2921_v22, %s2306_s28 }
 0x1b2   : > { %1101 = vrot.lane.b32.xlu1 %v2937_v63, %s2304_s19 }
 0x1b5   : > { %1057 = vrot.lane.b32.xlu0 %v2923_v34, %s2303_s17 }
 0x1b6   : > { %1059 = vrot.lane.b32.xlu1 %v2947_v53, %s2303_s17 }
 0x1b9   : > { %1105 = vrot.lane.b32.xlu0 %v2923_v34, %s2304_s19 }
 0x1ba   : > { %1107 = vrot.lane.b32.xlu1 %v2947_v53, %s2304_s19 }
 0x1bd   : > { %1077 = vrot.lane.b32.xlu0 %v2937_v63, %s2302_s15 }
 0x1be   : > { %v1042_v51 = vpop.f32.mrb[4].mxu0 }
 0x1bf   : > { %v2959_v14 = vmax.f32 %v1042_v51, 0.0  ;;  %v1044_v55 = vpop.f32.mrb[5].mxu0 }
 0x1c0   : > { %v1046_v10 = vpop.f32.mrb[6].mxu0  ;;  %v2977_v52 = vmax.f32 %v1044_v55, 0.0 }
 0x1c1   : > { %1125 = vrot.lane.b32.xlu0 %v2937_v63, %s2305_s22  ;;  %v1047_v43 = vpop.f32.mrb[7].mxu0  ;;  %1079 = vrot.lane.b32.xlu1 %v2959_v14, %s2302_s15 }
 0x1c5   : > { %1083 = vrot.lane.b32.xlu0 %v2947_v53, %s2302_s15  ;;  %1173 = vrot.lane.b32.xlu1 %v2937_v63, %s2307_s29 }
 0x1c9   : > { %1131 = vrot.lane.b32.xlu0 %v2947_v53, %s2305_s22  ;;  %1127 = vrot.lane.b32.xlu1 %v2959_v14, %s2305_s22 }
 0x1cd   : > { %1055 = vrot.lane.b32.xlu0 %v2959_v14, %s2303_s17  ;;  %1151 = vrot.lane.b32.xlu1 %v2959_v14, %s2306_s28 }
 0x1d1   : > { %1149 = vrot.lane.b32.xlu0 %v2937_v63, %s2306_s28  ;;  %1061 = vrot.lane.b32.xlu1 %v2977_v52, %s2303_s17 }
 0x1d2   : > { %v907_v37 = vpop.f32.mrb[0].mxu1 }
 0x1d3   : > { %v3030_v57 = vmax.f32 %v907_v37, 0.0  ;;  %v909_v6 = vpop.f32.mrb[1].mxu1 }
 0x1d4   : > { %v911_v8 = vpop.f32.mrb[2].mxu1  ;;  %v3034_v39 = vmax.f32 %v909_v6, 0.0 }
 0x1d5   : > { %1155 = vrot.lane.b32.xlu0 %v2947_v53, %s2306_s28  ;;  %1085 = vrot.lane.b32.xlu1 %v2977_v52, %s2302_s15  ;;  %v3036_v47 = vmax.f32 %v911_v8, 0.0  ;;  %v913_v45 = vpop.f32.mrb[3].mxu1 }
 0x1d6   : > { %v3042_v36 = vmax.f32 %v913_v45, 0.0 }
 0x1d9   : > { %1103 = vrot.lane.b32.xlu0 %v2959_v14, %s2304_s19  ;;  %1179 = vrot.lane.b32.xlu1 %v2947_v53, %s2307_s29 }
 0x1dd   : > { %1171 = vrot.lane.b32.xlu0 %v2921_v22, %s2307_s29  ;;  %1109 = vrot.lane.b32.xlu1 %v2977_v52, %s2304_s19 }
 0x1e1   : > { %1177 = vrot.lane.b32.xlu0 %v2923_v34, %s2307_s29  ;;  %1133 = vrot.lane.b32.xlu1 %v2977_v52, %s2305_s22 }
 0x1e5   : > { %1175 = vrot.lane.b32.xlu0 %v2959_v14, %s2307_s29  ;;  %1201 = vrot.lane.b32.xlu1 %v2923_v34, %s2308_s30 }
 0x1e9   : > { %1195 = vrot.lane.b32.xlu0 %v2921_v22, %s2308_s30  ;;  %1199 = vrot.lane.b32.xlu1 %v2959_v14, %s2308_s30 }
 0x1ed   : > { %1197 = vrot.lane.b32.xlu0 %v2937_v63, %s2308_s30  ;;  %1157 = vrot.lane.b32.xlu1 %v2977_v52, %s2306_s28 }
 0x1f1   : > { %1203 = vrot.lane.b32.xlu0 %v2947_v53, %s2308_s30  ;;  %1221 = vrot.lane.b32.xlu1 %v2937_v63, %s2309_s11 }
 0x1f5   : > { %1219 = vrot.lane.b32.xlu0 %v2921_v22, %s2309_s11  ;;  %1181 = vrot.lane.b32.xlu1 %v2977_v52, %s2307_s29 }
 0x1f9   : > { %1225 = vrot.lane.b32.xlu0 %v2923_v34, %s2309_s11  ;;  %1205 = vrot.lane.b32.xlu1 %v2977_v52, %s2308_s30 }
 0x1fd   : > { %1223 = vrot.lane.b32.xlu0 %v2959_v14, %s2309_s11  ;;  %1227 = vrot.lane.b32.xlu1 %v2947_v53, %s2309_s11 }
 0x201   : > { %1229 = vrot.lane.b32.xlu1 %v2977_v52, %s2309_s11  ;;  %1345 = vrot.lane.b32.xlu0 %v3030_v57, %s2303_s17 }
 0x205   : > { %1347 = vrot.lane.b32.xlu1 %v3036_v47, %s2303_s17  ;;  %1351 = vrot.lane.b32.xlu0 %v3034_v39, %s2303_s17 }
 0x209   : > { %1353 = vrot.lane.b32.xlu1 %v3042_v36, %s2303_s17  ;;  %1369 = vrot.lane.b32.xlu0 %v3030_v57, %s2302_s15 }
 0x20d   : > { %1371 = vrot.lane.b32.xlu1 %v3036_v47, %s2302_s15  ;;  %1375 = vrot.lane.b32.xlu0 %v3034_v39, %s2302_s15 }
 0x211   : > { %1377 = vrot.lane.b32.xlu1 %v3042_v36, %s2302_s15  ;;  %1393 = vrot.lane.b32.xlu0 %v3030_v57, %s2304_s19 }
 0x213   : > { %v1052_v59 = vpop.permute.xlu0 %1051 }
 0x214   : > { %v1082_v9 = vpop.permute.xlu1 %1081 }
 0x215   : > { %1395 = vrot.lane.b32.xlu1 %v3036_v47, %s2304_s19  ;;  %1399 = vrot.lane.b32.xlu0 %v3034_v39, %s2304_s19 }
 0x217   : > { %v1076_v19 = vpop.permute.xlu0 %1075 }
 0x218   : > { %v3062_v12 = vpop.permute.xlu1 %1129  ;;  %v1090_v37 = vsel %vm560_vm0, %v1082_v9, %v1076_v19  ;;  %v1087_v6 = vsel %vm560_vm0, %v1076_v19, %v1082_v9 }
 0x219   : > { %1401 = vrot.lane.b32.xlu1 %v3042_v36, %s2304_s19  ;;  %1417 = vrot.lane.b32.xlu0 %v3030_v57, %s2305_s22 }
 0x21b   : > { %v1100_v24 = vpop.permute.xlu0 %1099 }
 0x21c   : > { %v3068_v2 = vpop.permute.xlu1 %1153 }
 0x21d   : > { %1419 = vrot.lane.b32.xlu1 %v3036_v47, %s2305_s22 }
 0x21f   : > { %v3072_v13 = vpop.permute.xlu0 %1123 }
 0x220   : > { %v1054_v35 = vpop.permute.xlu1 %1053 }
 0x223   : > { %v3074_v23 = vpop.permute.xlu0 %1147 }
 0x224   : > { %v1102_v56 = vpop.permute.xlu1 %1101 }
 0x227   : > { %v1058_v30 = vpop.permute.xlu0 %1057 }
 0x228   : > { %v1063_v62 = vsel %vm527_vm1, %v1052_v59, %v1058_v30  ;;  %v1066_v4 = vsel %vm527_vm1, %v1058_v30, %v1052_v59  ;;  %v1060_v33 = vpop.permute.xlu1 %1059  ;;  %v1093_v59 = vmul.f32 %v1090_v37, %v2590_v27 }
 0x229   : > { %v1069_v5 = vmul.f32 %v1066_v4, %v2586_v26  ;;  %v1070_v1 = vmul.f32 %v1063_v62, %v2561_v17  ;;  %v1064_v15 = vsel %vm527_vm1, %v1054_v35, %v1060_v33  ;;  %v1067_v16 = vsel %vm527_vm1, %v1060_v33, %v1054_v35 }
 0x22a   : > { %v1071_v61 = vmul.f32 %v1067_v16, %v2586_v26  ;;  %v1072_v21 = vmul.f32 %v1064_v15, %v2561_v17  ;;  %v1094_v4 = vmul.f32 %v1087_v6, %v2565_v18 }
 0x22b   : > { %v1106_v60 = vpop.permute.xlu0 %1105 }
 0x22c   : > { %v1243_v29 = vpack.c.bf16 %v1071_v61, %v1069_v5  ;;  %v1244_v38 = vpack.c.bf16 %v1072_v21, %v1070_v1  ;;  %v1108_v48 = vpop.permute.xlu1 %1107  ;;  %v1111_v35 = vsel %vm593_vm2, %v1100_v24, %v1106_v60  ;;  %v1114_v15 = vsel %vm593_vm2, %v1106_v60, %v1100_v24 }
 0x22d   : > { %v1112_v33 = vsel %vm593_vm2, %v1102_v56, %v1108_v48  ;;  %v1118_v16 = vmul.f32 %v1111_v35, %v2615_v40 }
 0x22e   : > { %1292 = vmatprep.subr.bf16.mxu1 %v1244_v38  ;;  %v1120_v37 = vmul.f32 %v1112_v33, %v2615_v40  ;;  %v1138_v33 = vsel %vm626_vm3, %v3062_v12, %v3072_v13 }
 0x22f   : > { %v1078_v28 = vpop.permute.xlu0 %1077  ;;  %1293 = vmatpush1.bf16.msra.mxu1 %v1243_v29 }
 0x233   : > { %v1126_v25 = vpop.permute.xlu0 %1125  ;;  %v1080_v50 = vpop.permute.xlu1 %1079 }
 0x237   : > { %v1084_v7 = vpop.permute.xlu0 %1083  ;;  %v3088_v51 = vpop.permute.xlu1 %1173 }
 0x238   : > { %v1088_v5 = vsel %vm560_vm0, %v1078_v28, %v1084_v7  ;;  %v1091_v1 = vsel %vm560_vm0, %v1084_v7, %v1078_v28 }
 0x239   : > { %v1095_v60 = vmul.f32 %v1091_v1, %v2590_v27  ;;  %v1096_v7 = vmul.f32 %v1088_v5, %v2565_v18 }
 0x23b   : > { %v1132_v55 = vpop.permute.xlu0 %1131  ;;  %v3090_v10 = vpop.permute.xlu1 %1127 }
 0x23f   : > { %v1056_v43 = vpop.permute.xlu0 %1055  ;;  %v3092_v54 = vpop.permute.xlu1 %1151 }
 0x243   : > { %v3098_v8 = vpop.permute.xlu0 %1149  ;;  %v1062_v45 = vpop.permute.xlu1 %1061 }
 0x244   : > { %v1065_v30 = vsel %vm527_vm1, %v1056_v43, %v1062_v45  ;;  %v1068_v62 = vsel %vm527_vm1, %v1062_v45, %v1056_v43  ;;  %v1115_v43 = vsel %vm593_vm2, %v1108_v48, %v1102_v56 }
 0x245   : > { %v3111_v9 = vmul.f32 %v1068_v62, %v2586_v26  ;;  %v3114_v19 = vmul.f32 %v1065_v30, %v2561_v17  ;;  %v1119_v30 = vmul.f32 %v1115_v43, %v2638_v49  ;;  %v1250_v62 = vpack.c.bf16 %v1120_v37, %v1118_v16 }
 0x246   : > { %v1139_v37 = vsel %vm626_vm3, %v1132_v55, %v1126_v25 }
 0x247   : > { %v1245_v61 = vpack.c.bf16 %v1093_v59, %v3111_v9  ;;  %v3124_v21 = vpop.permute.xlu0 %1155  ;;  %v1086_v29 = vpop.permute.xlu1 %1085  ;;  %v1246_v38 = vpack.c.bf16 %v1094_v4, %v3114_v19  ;;  %v1135_v4 = vsel %vm626_vm3, %v3072_v13, %v3062_v12  ;;  %v1136_v13 = vsel %vm626_vm3, %v1126_v25, %v1132_v55 }
 0x248   : > { %v1089_v28 = vsel %vm560_vm0, %v1080_v50, %v1086_v29  ;;  %v1092_v24 = vsel %vm560_vm0, %v1086_v29, %v1080_v50  ;;  %v1117_v50 = vmul.f32 %v1114_v15, %v2638_v49  ;;  %v1141_v29 = vmul.f32 %v1138_v33, %v2632_v46 }
 0x249   : > { %v3137_v6 = vmul.f32 %v1092_v24, %v2590_v27  ;;  %v3140_v45 = vmul.f32 %v1089_v28, %v2565_v18  ;;  %1294 = vmatprep.subr.bf16.mxu1 %v1246_v38  ;;  %v1142_v38 = vmul.f32 %v1135_v4, %v2620_v41 }
 0x24a   : > { %1295 = vmatpush1.bf16.msra.mxu1 %v1245_v61  ;;  %v1249_v61 = vpack.c.bf16 %v1119_v30, %v1117_v50  ;;  %v1144_v50 = vmul.f32 %v1136_v13, %v2620_v41  ;;  %v1162_v30 = vsel %vm659_vm4, %v3068_v2, %v3074_v23  ;;  %v1160_v13 = vsel %vm659_vm4, %v3098_v8, %v3124_v21 }
 0x24b   : > { %v1247_v56 = vpack.c.bf16 %v3137_v6, %v1095_v60  ;;  %v1104_v48 = vpop.permute.xlu0 %1103  ;;  %v3143_v59 = vpop.permute.xlu1 %1179  ;;  %v1248_v35 = vpack.c.bf16 %v3140_v45, %v1096_v7 }
 0x24d   : > { %1296 = vmatprep.subr.bf16.mxu1 %v1248_v35  ;;  %v1143_v35 = vmul.f32 %v1139_v37, %v2632_v46 }
 0x24e   : > { %1297 = vmatpush1.bf16.msra.mxu1 %v1247_v56 }
 0x24f   : > { %v1172_v5 = vpop.permute.xlu0 %1171  ;;  %1298 = vmatprep.subr.bf16.mxu1 %v1250_v62  ;;  %v1110_v1 = vpop.permute.xlu1 %1109 }
 0x250   : > { %v1113_v15 = vsel %vm593_vm2, %v1104_v48, %v1110_v1  ;;  %v1116_v16 = vsel %vm593_vm2, %v1110_v1, %v1104_v48  ;;  %v1159_v1 = vsel %vm659_vm4, %v3074_v23, %v3068_v2  ;;  %v1255_v2 = vpack.c.bf16 %v2937_v63, %v2921_v22 }
 0x251   : > { %v3163_v43 = vmul.f32 %v1116_v16, %v2638_v49  ;;  %v3166_v12 = vmul.f32 %v1113_v15, %v2615_v40  ;;  %v1256_v15 = vpack.c.bf16 %v2947_v53, %v2923_v34  ;;  %v1165_v16 = vmul.f32 %v1159_v1, %v2668_v0 }
 0x252   : > { %1299 = vmatpush1.bf16.msra.mxu1 %v1249_v61  ;;  %v1166_v61 = vmul.f32 %v1162_v30, %v2658_v58  ;;  %v1163_v23 = vsel %vm659_vm4, %v3124_v21, %v3098_v8  ;;  %v1187_v63 = vsel %vm692_vm5, %v3143_v59, %v3088_v51  ;;  %v1184_v30 = vsel %vm692_vm5, %v3088_v51, %v3143_v59 }
 0x253   : > { %v1251_v28 = vpack.c.bf16 %v1141_v29, %v3163_v43  ;;  %v1178_v24 = vpop.permute.xlu0 %1177  ;;  %v1134_v60 = vpop.permute.xlu1 %1133  ;;  %v1252_v7 = vpack.c.bf16 %v1142_v38, %v3166_v12  ;;  %v1257_v37 = vpack.c.bf16 %v1165_v16, %v2959_v14  ;;  %v1168_v22 = vmul.f32 %v1163_v23, %v2658_v58 }
 0x254   : > { %v1137_v56 = vsel %vm626_vm3, %v3090_v10, %v1134_v60  ;;  %v1140_v48 = vsel %vm626_vm3, %v1134_v60, %v3090_v10  ;;  %v1258_v34 = vpack.c.bf16 %v1166_v61, %v2977_v52  ;;  %v1186_v53 = vsel %vm692_vm5, %v1178_v24, %v1172_v5 }
 0x255   : > { %v3183_v25 = vmul.f32 %v1140_v48, %v2632_v46  ;;  %v3186_v55 = vmul.f32 %v1137_v56, %v2620_v41  ;;  %1300 = vmatprep.subr.bf16.mxu1 %v1252_v7  ;;  %v1183_v56 = vsel %vm692_vm5, %v1172_v5, %v1178_v24  ;;  %v1190_v48 = vmul.f32 %v1186_v53, %v2689_v31 }
 0x256   : > { %1301 = vmatpush1.bf16.msra.mxu1 %v1251_v28  ;;  %v1167_v28 = vmul.f32 %v1160_v13, %v2668_v0  ;;  %v1189_v1 = vmul.f32 %v1183_v56, %v2709_v42 }
 0x257   : > { %v1253_v62 = vpack.c.bf16 %v3183_v25, %v1143_v35  ;;  %v1176_v10 = vpop.permute.xlu0 %1175  ;;  %v1202_v4 = vpop.permute.xlu1 %1201  ;;  %v1254_v33 = vpack.c.bf16 %v3186_v55, %v1144_v50 }
 0x259   : > { %1302 = vmatprep.subr.bf16.mxu1 %v1254_v33 }
 0x25a   : > { %1303 = vmatpush1.bf16.msra.mxu1 %v1253_v62  ;;  %v1192_v62 = vmul.f32 %v1187_v63, %v2689_v31 }
 0x25b   : > { %v1196_v29 = vpop.permute.xlu0 %1195  ;;  %v1200_v38 = vpop.permute.xlu1 %1199  ;;  %1304 = vmatprep.subr.bf16.mxu1 %v1256_v15  ;;  %v1191_v15 = vmul.f32 %v1184_v30, %v2709_v42 }
 0x25c   : > { %v1262_v61 = vpack.c.bf16 %v1192_v62, %v1190_v48  ;;  %v1207_v16 = vsel %vm725_vm6, %v1196_v29, %v1202_v4  ;;  %v1210_v51 = vsel %vm725_vm6, %v1202_v4, %v1196_v29 }
 0x25d   : > { %v1213_v53 = vmul.f32 %v1207_v16, %v2714_v44  ;;  %v3853_v16 = vld [vmem:[#allocation10_spill] sm:$0xff] }
 0x25e   : > { %1305 = vmatpush1.bf16.msra.mxu1 %v1255_v2  ;;  %v1261_v2 = vpack.c.bf16 %v1191_v15, %v1189_v1 }
 0x25f   : > { %v1198_v60 = vpop.permute.xlu0 %1197  ;;  %v1158_v7 = vpop.permute.xlu1 %1157  ;;  %1306 = vmatprep.subr.bf16.mxu1 %v1258_v34 }
 0x260   : > { %v1161_v8 = vsel %vm659_vm4, %v3092_v54, %v1158_v7  ;;  %v1164_v21 = vsel %vm659_vm4, %v1158_v7, %v3092_v54 }
 0x261   : > { %v3232_v35 = vmul.f32 %v1161_v8, %v2668_v0  ;;  %v3235_v50 = vmul.f32 %v1164_v21, %v2658_v58 }
 0x262   : > { %1307 = vmatpush1.bf16.msra.mxu1 %v1257_v37  ;;  %v1214_v37 = vmul.f32 %v1210_v51, %v2694_v32 }
 0x263   : > { %v1259_v54 = vpack.c.bf16 %v3232_v35, %v1167_v28  ;;  %v1204_v33 = vpop.permute.xlu0 %1203  ;;  %v1222_v5 = vpop.permute.xlu1 %1221  ;;  %v1260_v24 = vpack.c.bf16 %v3235_v50, %v1168_v22 }
 0x264   : > { %v1208_v29 = vsel %vm725_vm6, %v1198_v60, %v1204_v33  ;;  %v1211_v7 = vsel %vm725_vm6, %v1204_v33, %v1198_v60 }
 0x265   : > { %1308 = vmatprep.subr.bf16.mxu1 %v1260_v24  ;;  %v1215_v48 = vmul.f32 %v1208_v29, %v2714_v44  ;;  %v1216_v30 = vmul.f32 %v1211_v7, %v2694_v32 }
 0x266   : > { %1309 = vmatpush1.bf16.msra.mxu1 %v1259_v54 }
 0x267   : > { %v1220_v59 = vpop.permute.xlu0 %1219  ;;  %v1182_v13 = vpop.permute.xlu1 %1181  ;;  %1310 = vmatprep.subr.bf16.mxu1 %v1262_v61 }
 0x268   : > { %v1185_v23 = vsel %vm692_vm5, %v1176_v10, %v1182_v13  ;;  %v1188_v34 = vsel %vm692_vm5, %v1182_v13, %v1176_v10  ;;  %v3854_v13 = vld [vmem:[#allocation11_spill] sm:$0xff] }
 0x269   : > { %v3257_v28 = vmul.f32 %v1185_v23, %v2709_v42  ;;  %v3260_v4 = vmul.f32 %v1188_v34, %v2689_v31 }
 0x26a   : > { %1311 = vmatpush1.bf16.msra.mxu1 %v1261_v2 }
 0x26b   : > { %v1263_v22 = vpack.c.bf16 %v1213_v53, %v3257_v28  ;;  %v1226_v10 = vpop.permute.xlu0 %1225  ;;  %v1206_v63 = vpop.permute.xlu1 %1205  ;;  %v1264_v8 = vpack.c.bf16 %v1214_v37, %v3260_v4 }
 0x26c   : > { %v1209_v21 = vsel %vm725_vm6, %v1200_v38, %v1206_v63  ;;  %v1212_v56 = vsel %vm725_vm6, %v1206_v63, %v1200_v38  ;;  %v1231_v54 = vsel %vm758_vm8, %v1220_v59, %v1226_v10  ;;  %v1234_v33 = vsel %vm758_vm8, %v1226_v10, %v1220_v59 }
 0x26d   : > { %v3275_v62 = vmul.f32 %v1209_v21, %v2714_v44  ;;  %v3278_v60 = vmul.f32 %v1212_v56, %v2694_v32  ;;  %1312 = vmatprep.subr.bf16.mxu1 %v1264_v8  ;;  %v1237_v51 = vmul.f32 %v3853_v16, %v1231_v54  ;;  %v1238_v2 = vmul.f32 %v3854_v13, %v1234_v33 }
 0x26e   : > { %1313 = vmatpush1.bf16.msra.mxu1 %v1263_v22 }
 0x26f   : > { %v1265_v38 = vpack.c.bf16 %v3275_v62, %v1215_v48  ;;  %v1228_v24 = vpop.permute.xlu1 %1227  ;;  %v1266_v1 = vpack.c.bf16 %v3278_v60, %v1216_v30  ;;  %v1224_v34 = vpop.permute.xlu0 %1223  ;;  %v2232_v48 = vld [vmem:[%s3827_s7] ss:$8 sps:$4 sm:$0xff]  }
 0x270   : > { %v1232_v61 = vsel %vm758_vm8, %v1222_v5, %v1228_v24  ;;  %v1235_v15 = vsel %vm758_vm8, %v1228_v24, %v1222_v5 }
 0x271   : > { %v1239_v23 = vmul.f32 %v3853_v16, %v1232_v61  ;;  %v1240_v59 = vmul.f32 %v3854_v13, %v1235_v15  ;;  %1314 = vmatprep.subr.bf16.mxu1 %v1266_v1 }
 0x272   : > { %1315 = vmatpush1.bf16.msra.mxu1 %v1265_v38 }
 0x273   : > { %v1267_v53 = vpack.c.bf16 %v1239_v23, %v1237_v51  ;;  %v1230_v37 = vpop.permute.xlu1 %1229  ;;  %v1268_v29 = vpack.c.bf16 %v1240_v59, %v1238_v2  ;;  %v1346_v30 = vpop.permute.xlu0 %1345 }
 0x274   : > { %v1233_v7 = vsel %vm758_vm8, %v1224_v34, %v1230_v37  ;;  %v1236_v5 = vsel %vm758_vm8, %v1230_v37, %v1224_v34 }
 0x275   : > { %v3299_v22 = vmul.f32 %v3853_v16, %v1233_v7  ;;  %v3302_v10 = vmul.f32 %v3854_v13, %v1236_v5  ;;  %1316 = vmatprep.subr.bf16.mxu1 %v1268_v29 }
 0x276   : > { %1317 = vmatpush1.bf16.msra.mxu1 %v1267_v53 }
 0x277   : > { %v1269_v63 = vpack.c.bf16 %v3852_v20, %v3299_v22  ;;  %v1270_v8 = vpack.c.bf16 %v3852_v20, %v3302_v10  ;;  %v1348_v54 = vpop.permute.xlu1 %1347  ;;  %v1352_v33 = vpop.permute.xlu0 %1351 }
 0x278   : > { %v1360_v24 = vsel %vm527_vm1, %v1352_v33, %v1346_v30 }
 0x279   : > { %v1287_v21 = vand.u32 %v1269_v63, %v2749_v3  ;;  %v1290_v56 = vand.u32 %v1270_v8, %v2749_v3  ;;  %v1357_v3 = vsel %vm527_vm1, %v1346_v30, %v1352_v33  ;;  %v1363_v61 = vmul.f32 %v1360_v24, %v2586_v26  ;;  %v513_v24 = vld [vmem:[%s2425_s27] sm:$0xff] }
 0x27a   : > { %v1364_v16 = vmul.f32 %v1357_v3, %v2561_v17  ;;  %v514_v3 = vld [vmem:[%s2425_s27 + $0x8] sm:$0xff] }
 0x27b   : > { %1318 = vmatprep.subr.bf16.mxu1 %v1290_v56  ;;  %v1354_v38 = vpop.permute.xlu1 %1353 }
 0x27c   : > { %1319 = vmatpush1.bf16.msra.mxu1 %v1287_v21  ;;  %v1361_v20 = vsel %vm527_vm1, %v1354_v38, %v1348_v54  ;;  %v1358_v1 = vsel %vm527_vm1, %v1348_v54, %v1354_v38 }
 0x27d   : > { %v1365_v15 = vmul.f32 %v1361_v20, %v2586_v26  ;;  %v1366_v51 = vmul.f32 %v1358_v1, %v2561_v17 }
 0x27f   : > { %1325 = vmatmul.mubr.bf16.vlgmr.msra.gmra.mrb[4].mxu1 %v2232_v48  ;;  %v1537_v13 = vpack.c.bf16 %v1365_v15, %v1363_v61  ;;  %v1538_v2 = vpack.c.bf16 %v1366_v51, %v1364_v16 }
 0x281   : > { %1603 = vmatprep.subr.bf16.mxu0 %v1538_v2 }
 0x282   : > { %1604 = vmatpush1.bf16.msra.mxu0 %v1537_v13 }
 0x352   : > { %v1326_v23 = vpop.f32.mrb[4].mxu1 }
 0x353   : > { %v1328_v59 = vpop.f32.mrb[5].mxu1  ;;  %v1907_v53 = vmul.f32 %v1326_v23, %v1326_v23 }
 0x354   : > { %v1330_v34 = vpop.f32.mrb[6].mxu1  ;;  %v1908_v63 = vmul.f32 %v1328_v59, %v1328_v59 }
 0x355   : > { %v1335_v37 = vmul.f32 0.5, %v1330_v34  ;;  %v1905_v29 = vadd.f32 1.0, %v1330_v34  ;;  %v1911_v7 = vmul.f32 1.442695, %v1330_v34  ;;  %v1332_v5 = vpop.f32.mrb[7].mxu1 }
 0x356   : > { %v1336_v8 = vmul.f32 0.5, %v1332_v5  ;;  %v1906_v21 = vadd.f32 1.0, %v1332_v5  ;;  %v1913_v56 = vmul.f32 1.442695, %v1332_v5 }
 0x357   : > { %v1337_v48 = vmul.f32 1.442695, %v1335_v37  ;;  %v1909_v30 = vsub.f32 %v1905_v29, %v1907_v53  ;;  %2239 = vpow2.f32 %v1911_v7  ;;  %v1372_v37 = vpop.permute.xlu1 %1371 }
 0x358   : > { %v1339_v54 = vmul.f32 1.442695, %v1336_v8  ;;  %v1910_v33 = vsub.f32 %v1906_v21, %v1908_v63  ;;  %2241 = vpow2.f32 %v1913_v56 }
 0x359   : > { %2243 = vpow2.f32 %v1337_v48 }
 0x35a   : > { %2245 = vpow2.f32 %v1339_v54 }
 0x35b   : > { %v1378_v7 = vpop.permute.xlu1 %1377 }
 0x35c   : > { %v1382_v54 = vsel %vm560_vm0, %v1372_v37, %v1378_v7 }
 0x35f   : > { %v1396_v63 = vpop.permute.xlu1 %1395 }
 0x361   : > { %v2240_v38 = vpop.eup %2239 }
 0x362   : > { %v2242_v20 = vpop.eup %2241  ;;  %v1915_v1 = vsub.f32 %v1909_v30, %v2240_v38 }
 0x363   : > { %v2244_v61 = vpop.eup %2243  ;;  %v1916_v15 = vsub.f32 %v1910_v33, %v2242_v20  ;;  %v1402_v21 = vpop.permute.xlu1 %1401  ;;  %v1385_v20 = vsel %vm560_vm0, %v1378_v7, %v1372_v37 }
 0x364   : > { %v2246_v16 = vpop.eup %2245  ;;  %v1341_v51 = vmul.f32 %v2244_v61, %v513_v24 }
 0x365   : > { %v1342_v13 = vmul.f32 %v2246_v16, %v514_v3  ;;  %v3327_v2 = vadd.f32 %v1916_v15, %v1915_v1  ;;  %v1390_v15 = vmul.f32 %v1382_v54, %v2565_v18  ;;  %v1406_v54 = vsel %vm593_vm2, %v1396_v63, %v1402_v21 }
 0x366   : > { %v3329_v34 = vadd.f32 %v1341_v51, %v1326_v23  ;;  %v2235_v23 = vld [vmem:[%s3828_s8 + $0x4] ss:$12 sps:$4 sm:$0xff]  }
 0x367   : > { %v3331_v53 = vadd.f32 %v1342_v13, %v1328_v59  ;;  %1635 = vmatprep.mubr.bf16.mxu0 %v2235_v23  ;;  %v1370_v59 = vpop.permute.xlu0 %1369  ;;  %v1420_v48 = vpop.permute.xlu1 %1419 }
 0x368   : > { %1349 = vrot.lane.b32.xlu0 %v3329_v34, %s2303_s17 }
 0x369   : > { %1355 = vrot.lane.b32.xlu1 %v3331_v53, %s2303_s17 }
 0x36b   : > { %v1376_v29 = vpop.permute.xlu0 %1375 }
 0x36c   : > { %1423 = vrot.lane.b32.xlu0 %v3034_v39, %s2305_s22  ;;  %v1381_v30 = vsel %vm560_vm0, %v1370_v59, %v1376_v29  ;;  %v1384_v24 = vsel %vm560_vm0, %v1376_v29, %v1370_v59  ;;  %v1389_v59 = vmul.f32 %v1385_v20, %v2590_v27 }
 0x36d   : > { %1425 = vrot.lane.b32.xlu1 %v3042_v36, %s2305_s22  ;;  %v1388_v61 = vmul.f32 %v1381_v30, %v2565_v18  ;;  %v1387_v23 = vmul.f32 %v1384_v24, %v2590_v27 }
 0x36f   : > { %v1394_v5 = vpop.permute.xlu0 %1393 }
 0x370   : > { %1373 = vrot.lane.b32.xlu0 %v3329_v34, %s2302_s15 }
 0x371   : > { %1379 = vrot.lane.b32.xlu1 %v3331_v53, %s2302_s15 }
 0x373   : > { %v1400_v8 = vpop.permute.xlu0 %1399 }
 0x374   : > { %1397 = vrot.lane.b32.xlu0 %v3329_v34, %s2304_s19  ;;  %v1405_v30 = vsel %vm593_vm2, %v1394_v5, %v1400_v8  ;;  %v1408_v20 = vsel %vm593_vm2, %v1400_v8, %v1394_v5 }
 0x375   : > { %1443 = vrot.lane.b32.xlu1 %v3036_v47, %s2306_s28  ;;  %v1411_v5 = vmul.f32 %v1408_v20, %v2638_v49 }
 0x377   : > { %v1418_v56 = vpop.permute.xlu0 %1417 }
 0x378   : > { %1421 = vrot.lane.b32.xlu0 %v3329_v34, %s2305_s22 }
 0x379   : > { %1403 = vrot.lane.b32.xlu1 %v3331_v53, %s2304_s19 }
 0x37c   : > { %1441 = vrot.lane.b32.xlu0 %v3030_v57, %s2306_s28 }
 0x37d   : > { %1449 = vrot.lane.b32.xlu1 %v3042_v36, %s2306_s28 }
 0x380   : > { %1447 = vrot.lane.b32.xlu0 %v3034_v39, %s2306_s28 }
 0x381   : > { %1427 = vrot.lane.b32.xlu1 %v3331_v53, %s2305_s22 }
 0x384   : > { %1445 = vrot.lane.b32.xlu0 %v3329_v34, %s2306_s28 }
 0x385   : > { %1467 = vrot.lane.b32.xlu1 %v3036_v47, %s2307_s29 }
 0x388   : > { %1465 = vrot.lane.b32.xlu0 %v3030_v57, %s2307_s29 }
 0x389   : > { %1473 = vrot.lane.b32.xlu1 %v3042_v36, %s2307_s29 }
 0x38c   : > { %1471 = vrot.lane.b32.xlu0 %v3034_v39, %s2307_s29 }
 0x38d   : > { %1491 = vrot.lane.b32.xlu1 %v3036_v47, %s2308_s30 }
 0x390   : > { %1469 = vrot.lane.b32.xlu0 %v3329_v34, %s2307_s29 }
 0x391   : > { %1451 = vrot.lane.b32.xlu1 %v3331_v53, %s2306_s28 }
 0x394   : > { %1489 = vrot.lane.b32.xlu0 %v3030_v57, %s2308_s30 }
 0x395   : > { %1497 = vrot.lane.b32.xlu1 %v3042_v36, %s2308_s30 }
 0x398   : > { %1495 = vrot.lane.b32.xlu0 %v3034_v39, %s2308_s30 }
 0x399   : > { %1475 = vrot.lane.b32.xlu1 %v3331_v53, %s2307_s29 }
 0x39c   : > { %1493 = vrot.lane.b32.xlu0 %v3329_v34, %s2308_s30 }
 0x39d   : > { %1515 = vrot.lane.b32.xlu1 %v3036_v47, %s2309_s11 }
 0x3a0   : > { %1513 = vrot.lane.b32.xlu0 %v3030_v57, %s2309_s11 }
 0x3a1   : > { %1499 = vrot.lane.b32.xlu1 %v3331_v53, %s2308_s30 }
 0x3a4   : > { %1519 = vrot.lane.b32.xlu0 %v3034_v39, %s2309_s11 }
 0x3a5   : > { %1521 = vrot.lane.b32.xlu1 %v3042_v36, %s2309_s11 }
 0x3a8   : > { %1517 = vrot.lane.b32.xlu0 %v3329_v34, %s2309_s11 }
 0x3a9   : > { %1523 = vrot.lane.b32.xlu1 %v3331_v53, %s2309_s11 }
 0x3da   : > { %v1350_v33 = vpop.permute.xlu0 %1349 }
 0x3db   : > { %v1356_v38 = vpop.permute.xlu1 %1355 }
 0x3dc   : > { %v1359_v3 = vsel %vm527_vm1, %v1350_v33, %v1356_v38  ;;  %v1362_v1 = vsel %vm527_vm1, %v1356_v38, %v1350_v33  ;;  %v1542_v33 = vpack.c.bf16 %v1390_v15, %v1388_v61  ;;  %v1412_v61 = vmul.f32 %v1405_v30, %v2615_v40 }
 0x3dd   : > { %v1367_v16 = vmul.f32 %v1362_v1, %v2586_v26  ;;  %v1368_v51 = vmul.f32 %v1359_v3, %v2561_v17  ;;  %v1541_v3 = vpack.c.bf16 %v1389_v59, %v1387_v23  ;;  %v1414_v15 = vmul.f32 %v1406_v54, %v2615_v40 }
 0x3de   : > { %v1424_v13 = vpop.permute.xlu0 %1423 }
 0x3df   : > { %v1539_v37 = vpack.c.bf16 %v1367_v16, %v3111_v9  ;;  %v1426_v29 = vpop.permute.xlu1 %1425  ;;  %v1540_v7 = vpack.c.bf16 %v1368_v51, %v3114_v19  ;;  %v1409_v9 = vsel %vm593_vm2, %v1402_v21, %v1396_v63 }
 0x3e0   : > { %v1413_v63 = vmul.f32 %v1409_v9, %v2638_v49  ;;  %v1433_v20 = vsel %vm626_vm3, %v1426_v29, %v1420_v48 }
 0x3e1   : > { %1605 = vmatprep.subr.bf16.mxu0 %v1540_v7  ;;  %v1546_v7 = vpack.c.bf16 %v1414_v15, %v1412_v61 }
 0x3e2   : > { %v1374_v38 = vpop.permute.xlu0 %1373  ;;  %1606 = vmatpush1.bf16.msra.mxu0 %v1539_v37  ;;  %v1429_v37 = vsel %vm626_vm3, %v1418_v56, %v1424_v13  ;;  %v1545_v54 = vpack.c.bf16 %v1413_v63, %v1411_v5 }
 0x3e3   : > { %1607 = vmatprep.subr.bf16.mxu0 %v1542_v33  ;;  %v1380_v24 = vpop.permute.xlu1 %1379  ;;  %v1430_v33 = vsel %vm626_vm3, %v1420_v48, %v1426_v29 }
 0x3e4   : > { %v1383_v19 = vsel %vm560_vm0, %v1374_v38, %v1380_v24  ;;  %v1386_v1 = vsel %vm560_vm0, %v1380_v24, %v1374_v38  ;;  %v1438_v9 = vmul.f32 %v1430_v33, %v2620_v41 }
 0x3e5   : > { %v1391_v16 = vmul.f32 %v1386_v1, %v2590_v27  ;;  %v1392_v51 = vmul.f32 %v1383_v19, %v2565_v18 }
 0x3e6   : > { %v1398_v23 = vpop.permute.xlu0 %1397  ;;  %1608 = vmatpush1.bf16.msra.mxu0 %v1541_v3  ;;  %v1432_v3 = vsel %vm626_vm3, %v1424_v13, %v1418_v56 }
 0x3e7   : > { %v1543_v8 = vpack.c.bf16 %v1391_v16, %v3137_v6  ;;  %v1444_v21 = vpop.permute.xlu1 %1443  ;;  %v1544_v59 = vpack.c.bf16 %v1392_v51, %v3140_v45  ;;  %v1436_v6 = vmul.f32 %v1429_v37, %v2620_v41  ;;  %v1435_v16 = vmul.f32 %v1432_v3, %v2632_v46 }
 0x3e8   : > { %v1437_v51 = vmul.f32 %v1433_v20, %v2632_v46 }
 0x3e9   : > { %1609 = vmatprep.subr.bf16.mxu0 %v1544_v59 }
 0x3ea   : > { %v1422_v30 = vpop.permute.xlu0 %1421  ;;  %1610 = vmatpush1.bf16.msra.mxu0 %v1543_v8  ;;  %v1549_v5 = vpack.c.bf16 %v1437_v51, %v1435_v16 }
 0x3eb   : > { %1611 = vmatprep.subr.bf16.mxu0 %v1546_v7  ;;  %v1404_v38 = vpop.permute.xlu1 %1403 }
 0x3ec   : > { %v1407_v45 = vsel %vm593_vm2, %v1398_v23, %v1404_v38  ;;  %v1410_v24 = vsel %vm593_vm2, %v1404_v38, %v1398_v23  ;;  %v1550_v23 = vpack.c.bf16 %v1438_v9, %v1436_v6 }
 0x3ed   : > { %v1415_v19 = vmul.f32 %v1410_v24, %v2638_v49  ;;  %v1416_v1 = vmul.f32 %v1407_v45, %v2615_v40 }
 0x3ee   : > { %v1442_v61 = vpop.permute.xlu0 %1441  ;;  %1612 = vmatpush1.bf16.msra.mxu0 %v1545_v54  ;;  %v1554_v54 = vpack.c.bf16 %v3042_v36, %v3034_v39  ;;  %v1556_v39 = vpack.c.bf16 %v3331_v53, %v2977_v52 }
 0x3ef   : > { %v1547_v56 = vpack.c.bf16 %v1415_v19, %v3163_v43  ;;  %v1450_v13 = vpop.permute.xlu1 %1449  ;;  %v1548_v15 = vpack.c.bf16 %v1416_v1, %v3166_v12 }
 0x3f0   : > { %v1457_v6 = vsel %vm659_vm4, %v1450_v13, %v1444_v21  ;;  %v1454_v24 = vsel %vm659_vm4, %v1444_v21, %v1450_v13 }
 0x3f1   : > { %1613 = vmatprep.subr.bf16.mxu0 %v1548_v15  ;;  %v1462_v20 = vmul.f32 %v1457_v6, %v2658_v58  ;;  %v1461_v1 = vmul.f32 %v1454_v24, %v2668_v0 }
 0x3f2   : > { %v1448_v48 = vpop.permute.xlu0 %1447  ;;  %1614 = vmatpush1.bf16.msra.mxu0 %v1547_v56 }
 0x3f3   : > { %1615 = vmatprep.subr.bf16.mxu0 %v1550_v23  ;;  %v1428_v29 = vpop.permute.xlu1 %1427  ;;  %v1456_v38 = vsel %vm659_vm4, %v1448_v48, %v1442_v61 }
 0x3f4   : > { %v1431_v63 = vsel %vm626_vm3, %v1422_v30, %v1428_v29  ;;  %v1434_v43 = vsel %vm626_vm3, %v1428_v29, %v1422_v30  ;;  %v1460_v45 = vmul.f32 %v1456_v38, %v2658_v58 }
 0x3f5   : > { %v1439_v8 = vmul.f32 %v1434_v43, %v2632_v46  ;;  %v1440_v12 = vmul.f32 %v1431_v63, %v2620_v41 }
 0x3f6   : > { %v1446_v59 = vpop.permute.xlu0 %1445  ;;  %1616 = vmatpush1.bf16.msra.mxu0 %v1549_v5 }
 0x3f7   : > { %v1551_v37 = vpack.c.bf16 %v1439_v8, %v3183_v25  ;;  %v1468_v7 = vpop.permute.xlu1 %1467  ;;  %v1552_v33 = vpack.c.bf16 %v1440_v12, %v3186_v55  ;;  %v1553_v25 = vpack.c.bf16 %v3036_v47, %v3030_v57  ;;  %v1453_v55 = vsel %vm659_vm4, %v1442_v61, %v1448_v48 }
 0x3f8   : > { %v1459_v19 = vmul.f32 %v1453_v55, %v2668_v0  ;;  %v1555_v57 = vpack.c.bf16 %v3329_v34, %v2959_v14  ;;  %v1558_v47 = vpack.c.bf16 %v1462_v20, %v1460_v45 }
 0x3f9   : > { %1617 = vmatprep.subr.bf16.mxu0 %v1552_v33 }
 0x3fa   : > { %v1466_v3 = vpop.permute.xlu0 %1465  ;;  %1618 = vmatpush1.bf16.msra.mxu0 %v1551_v37  ;;  %v1557_v21 = vpack.c.bf16 %v1461_v1, %v1459_v19 }
 0x3fb   : > { %1619 = vmatprep.subr.bf16.mxu0 %v1554_v54  ;;  %v1474_v30 = vpop.permute.xlu1 %1473 }
 0x3fc   : > { %v1481_v56 = vsel %vm692_vm5, %v1474_v30, %v1468_v7  ;;  %v1478_v48 = vsel %vm692_vm5, %v1468_v7, %v1474_v30 }
 0x3fd   : > { %v1486_v29 = vmul.f32 %v1481_v56, %v2689_v31 }
 0x3fe   : > { %v1472_v36 = vpop.permute.xlu0 %1471  ;;  %1620 = vmatpush1.bf16.msra.mxu0 %v1553_v25 }
 0x3ff   : > { %v1492_v9 = vpop.permute.xlu1 %1491  ;;  %1621 = vmatprep.subr.bf16.mxu0 %v1556_v39  ;;  %v1480_v52 = vsel %vm692_vm5, %v1472_v36, %v1466_v3  ;;  %v1477_v34 = vsel %vm692_vm5, %v1466_v3, %v1472_v36 }
 0x400   : > { %v1484_v15 = vmul.f32 %v1480_v52, %v2689_v31  ;;  %v1483_v8 = vmul.f32 %v1477_v34, %v2709_v42 }
 0x402   : > { %v1470_v53 = vpop.permute.xlu0 %1469  ;;  %1622 = vmatpush1.bf16.msra.mxu0 %v1555_v57  ;;  %v1562_v12 = vpack.c.bf16 %v1486_v29, %v1484_v15 }
 0x403   : > { %v1452_v61 = vpop.permute.xlu1 %1451  ;;  %1623 = vmatprep.subr.bf16.mxu0 %v1558_v47 }
 0x404   : > { %v1455_v13 = vsel %vm659_vm4, %v1446_v59, %v1452_v61  ;;  %v1458_v14 = vsel %vm659_vm4, %v1452_v61, %v1446_v59  ;;  %v1485_v59 = vmul.f32 %v1478_v48, %v2709_v42 }
 0x405   : > { %v1463_v16 = vmul.f32 %v1455_v13, %v2668_v0  ;;  %v1464_v51 = vmul.f32 %v1458_v14, %v2658_v58 }
 0x406   : > { %v1490_v23 = vpop.permute.xlu0 %1489  ;;  %1624 = vmatpush1.bf16.msra.mxu0 %v1557_v21  ;;  %v1561_v7 = vpack.c.bf16 %v1485_v59, %v1483_v8 }
 0x407   : > { %v1559_v5 = vpack.c.bf16 %v1463_v16, %v3232_v35  ;;  %v1498_v63 = vpop.permute.xlu1 %1497  ;;  %v1560_v43 = vpack.c.bf16 %v1464_v51, %v3235_v50  ;;  %v3547_v16 = vld [vmem:[%s3824_s4 + $0x20] ss:$0 sm:$0xff] }
 0x408   : > { %v1505_v35 = vsel %vm725_vm6, %v1498_v63, %v1492_v9  ;;  %v1502_v45 = vsel %vm725_vm6, %v1492_v9, %v1498_v63  ;;  %v2233_v63 = vld [vmem:[%s3828_s8] ss:$12 sps:$4 sm:$0xff]  }
 0x409   : > { %1625 = vmatprep.subr.bf16.mxu0 %v1560_v43  ;;  %v1510_v39 = vmul.f32 %v1505_v35, %v2694_v32  ;;  %v1509_v47 = vmul.f32 %v1502_v45, %v2714_v44 }
 0x40a   : > { %v1496_v37 = vpop.permute.xlu0 %1495  ;;  %1626 = vmatpush1.bf16.msra.mxu0 %v1559_v5 }
 0x40b   : > { %v1504_v33 = vsel %vm725_vm6, %v1496_v37, %v1490_v23  ;;  %v1476_v54 = vpop.permute.xlu1 %1475  ;;  %1627 = vmatprep.subr.bf16.mxu0 %v1562_v12  ;;  %v1501_v3 = vsel %vm725_vm6, %v1490_v23, %v1496_v37 }
 0x40c   : > { %v1479_v50 = vsel %vm692_vm5, %v1470_v53, %v1476_v54  ;;  %v1482_v38 = vsel %vm692_vm5, %v1476_v54, %v1470_v53  ;;  %v1508_v30 = vmul.f32 %v1504_v33, %v2694_v32  ;;  %v1507_v19 = vmul.f32 %v1501_v3, %v2714_v44 }
 0x40d   : > { %v1487_v6 = vmul.f32 %v1479_v50, %v2709_v42  ;;  %v1488_v25 = vmul.f32 %v1482_v38, %v2689_v31  ;;  %v3855_v54 = vmov 0  }
 0x40e   : > { %v1494_v55 = vpop.permute.xlu0 %1493  ;;  %1628 = vmatpush1.bf16.msra.mxu0 %v1561_v7  ;;  %v1566_v57 = vpack.c.bf16 %v1510_v39, %v1508_v30  ;;  %v1565_v53 = vpack.c.bf16 %v1509_v47, %v1507_v19  ;;  %v1599_v7 = vsel %vm1597_vm12, 65535, %v3855_v54 }
 0x40f   : > { %v1563_v36 = vpack.c.bf16 %v1487_v6, %v3257_v28  ;;  %v1516_v24 = vpop.permute.xlu1 %1515  ;;  %v1564_v20 = vpack.c.bf16 %v1488_v25, %v3260_v4  ;;  %v3576_v30 = vand.u32 1.0|1.0, %v1599_v7  ;;  %v2236_v6 = vld [vmem:[%s3828_s8 + $0x8] ss:$12 sps:$4 sm:$0xff]  }
 0x411   : > { %1629 = vmatprep.subr.bf16.mxu0 %v1564_v20 }
 0x412   : > { %v1514_v1 = vpop.permute.xlu0 %1513  ;;  %1630 = vmatpush1.bf16.msra.mxu0 %v1563_v36 }
 0x413   : > { %v1500_v52 = vpop.permute.xlu1 %1499  ;;  %1631 = vmatprep.subr.bf16.mxu0 %v1566_v57  ;;  %v3658_v57 = vld [vmem:[%s3829_s9] sm:$0xff] }
 0x414   : > { %v1503_v9 = vsel %vm725_vm6, %v1494_v55, %v1500_v52  ;;  %v1506_v28 = vsel %vm725_vm6, %v1500_v52, %v1494_v55  ;;  %v2153_v47 = vcombine.high %v3658_v57, %v3658_v57 }
 0x415   : > { %v1511_v61 = vmul.f32 %v1503_v9, %v2714_v44  ;;  %v1512_v4 = vmul.f32 %v1506_v28, %v2694_v32 }
 0x416   : > { %v1520_v21 = vpop.permute.xlu0 %1519  ;;  %1632 = vmatpush1.bf16.msra.mxu0 %v1565_v53  ;;  %2154 = vmatprep.mubr.msk.bf16.mxu1 %vm1846_vm14, %v2153_v47 }
 0x417   : > { %v1567_v56 = vpack.c.bf16 %v1511_v61, %v3275_v62  ;;  %v1525_v13 = vsel %vm758_vm8, %v1514_v1, %v1520_v21  ;;  %v1528_v14 = vsel %vm758_vm8, %v1520_v21, %v1514_v1  ;;  %v1522_v34 = vpop.permute.xlu1 %1521  ;;  %v1568_v15 = vpack.c.bf16 %v1512_v4, %v3278_v60  ;;  %v3553_v62 = vld [vmem:[%s3824_s4 + $0x28] ss:$0 sm:$0xff] }
 0x418   : > { %v1531_v51 = vmul.f32 %v3547_v16, %v1525_v13  ;;  %v1532_v23 = vmul.f32 %v3553_v62, %v1528_v14  ;;  %v1526_v48 = vsel %vm758_vm8, %v1516_v24, %v1522_v34  ;;  %v1529_v60 = vsel %vm758_vm8, %v1522_v34, %v1516_v24 }
 0x419   : > { %v1533_v29 = vmul.f32 %v3547_v16, %v1526_v48  ;;  %v1534_v5 = vmul.f32 %v3553_v62, %v1529_v60  ;;  %1633 = vmatprep.subr.bf16.mxu0 %v1568_v15 }
 0x41a   : > { %v1518_v43 = vpop.permute.xlu0 %1517  ;;  %1634 = vmatpush1.bf16.msra.mxu0 %v1567_v56 }
 0x41b   : > { %v1569_v8 = vpack.c.bf16 %v1533_v29, %v1531_v51  ;;  %v1524_v12 = vpop.permute.xlu1 %1523  ;;  %v1570_v59 = vpack.c.bf16 %v1534_v5, %v1532_v23 }
 0x41c   : > { %v1527_v37 = vsel %vm758_vm8, %v1518_v43, %v1524_v12  ;;  %v1530_v33 = vsel %vm758_vm8, %v1524_v12, %v1518_v43 }
 0x41d   : > { %v1535_v35 = vmul.f32 %v3547_v16, %v1527_v37  ;;  %v1536_v50 = vmul.f32 %v3553_v62, %v1530_v33  ;;  %1636 = vmatmul.mubr.bf16.vlgmr.msra.gmra.mrb[8].mxu0 %v2233_v63  ;;  %1646 = vmatprep.subr.bf16.mxu0 %v1570_v59 }
 0x41e   : > { %1647 = vmatpush1.bf16.msra.mxu0 %v1569_v8  ;;  %1678 = vmatprep.mubr.bf16.mxu0 %v3855_v54 }
 0x41f   : > { %v1571_v38 = vpack.c.bf16 %v1535_v35, %v3299_v22  ;;  %v1572_v3 = vpack.c.bf16 %v1536_v50, %v3302_v10 }
 0x421   : > { %1648 = vmatprep.subr.bf16.mxu0 %v1572_v3 }
 0x422   : > { %1649 = vmatpush1.bf16.msra.mxu0 %v1571_v38 }
 0x423   : > { %1650 = vmatprep.subr.bf16.mxu0 %v3576_v30 }
 0x426   : > { %1651 = vmatpush1.bf16.msra.mxu0 %v3576_v30 }
 0x429   : > { %2151 = vmatmul.mubr.msk.bf16.vlgmr.msra.gmra.mrb[8].mxu0 %vm1593_vm13, %v2236_v6 }
 0x4fc   : > { %v1680_v25 = vpop.f32.mrb[8].mxu0 }
 0x4fd   : > { %v3583_v55 = vmax.f32 %v1680_v25, 0.0  ;;  %v1682_v22 = vpop.f32.mrb[9].mxu0 }
 0x4fe   : > { %v1684_v45 = vpop.f32.mrb[10].mxu0  ;;  %v3589_v36 = vmax.f32 %v1682_v22, 0.0 }
 0x4ff   : > { %v3585_v10 = vmax.f32 %v1684_v45, 0.0  ;;  %1693 = vrot.lane.b32.xlu0 %v3583_v55, %s2303_s17  ;;  %v1686_v39 = vpop.f32.mrb[11].mxu0 }
 0x500   : > { %v3591_v24 = vmax.f32 %v1686_v39, 0.0 }
 0x501   : > { %1695 = vrot.lane.b32.xlu1 %v3585_v10, %s2303_s17  ;;  %v1829_v20 = vpack.c.bf16 %v3585_v10, %v3583_v55 }
 0x502   : > { %v1830_v19 = vpack.c.bf16 %v3591_v24, %v3589_v36 }
 0x503   : > { %1709 = vrot.lane.b32.xlu0 %v3583_v55, %s2302_s15 }
 0x505   : > { %1711 = vrot.lane.b32.xlu1 %v3585_v10, %s2302_s15 }
 0x507   : > { %1725 = vrot.lane.b32.xlu0 %v3583_v55, %s2304_s19 }
 0x509   : > { %1727 = vrot.lane.b32.xlu1 %v3585_v10, %s2304_s19 }
 0x50b   : > { %1741 = vrot.lane.b32.xlu0 %v3583_v55, %s2305_s22 }
 0x50d   : > { %1743 = vrot.lane.b32.xlu1 %v3585_v10, %s2305_s22 }
 0x50f   : > { %1757 = vrot.lane.b32.xlu0 %v3583_v55, %s2306_s28 }
 0x511   : > { %1759 = vrot.lane.b32.xlu1 %v3585_v10, %s2306_s28 }
 0x513   : > { %1773 = vrot.lane.b32.xlu0 %v3583_v55, %s2307_s29 }
 0x515   : > { %1775 = vrot.lane.b32.xlu1 %v3585_v10, %s2307_s29 }
 0x517   : > { %1789 = vrot.lane.b32.xlu0 %v3583_v55, %s2308_s30 }
 0x519   : > { %1791 = vrot.lane.b32.xlu1 %v3585_v10, %s2308_s30 }
 0x51b   : > { %1697 = vrot.lane.b32.xlu0 %v3589_v36, %s2303_s17 }
 0x51d   : > { %1699 = vrot.lane.b32.xlu1 %v3591_v24, %s2303_s17 }
 0x51f   : > { %1713 = vrot.lane.b32.xlu0 %v3589_v36, %s2302_s15 }
 0x521   : > { %1715 = vrot.lane.b32.xlu1 %v3591_v24, %s2302_s15 }
 0x523   : > { %1729 = vrot.lane.b32.xlu0 %v3589_v36, %s2304_s19 }
 0x525   : > { %1731 = vrot.lane.b32.xlu1 %v3591_v24, %s2304_s19  ;;  %s2157_s19 = sld [smem:[#allocation3 + $0x1]] }
 0x527   : > { %1745 = vrot.lane.b32.xlu0 %v3589_v36, %s2305_s22 }
 0x529   : > { %1747 = vrot.lane.b32.xlu1 %v3591_v24, %s2305_s22 }
 0x52b   : > { %1805 = vrot.lane.b32.xlu0 %v3583_v55, %s2309_s11 }
 0x52d   : > { %1807 = vrot.lane.b32.xlu1 %v3585_v10, %s2309_s11 }
 0x52f   : > { %1761 = vrot.lane.b32.xlu0 %v3589_v36, %s2306_s28 }
 0x531   : > { %1763 = vrot.lane.b32.xlu1 %v3591_v24, %s2306_s28 }
 0x533   : > { %1777 = vrot.lane.b32.xlu0 %v3589_v36, %s2307_s29 }
 0x535   : > { %1779 = vrot.lane.b32.xlu1 %v3591_v24, %s2307_s29 }
 0x537   : > { %1793 = vrot.lane.b32.xlu0 %v3589_v36, %s2308_s30 }
 0x539   : > { %1795 = vrot.lane.b32.xlu1 %v3591_v24, %s2308_s30 }
 0x53b   : > { %1809 = vrot.lane.b32.xlu0 %v3589_v36, %s2309_s11 }
 0x53d   : > { %1811 = vrot.lane.b32.xlu1 %v3591_v24, %s2309_s11  ;;  %s1965_s11 = sld [smem:[#allocation3]] }
 0x55a   : > { %1918 = vadd.xlane.f32.xlu0 %v3327_v2 }
 0x571   : > { %v1694_v1 = vpop.permute.xlu0 %1693 }
 0x573   : > { %v1696_v52 = vpop.permute.xlu1 %1695 }
 0x575   : > { %v1710_v53 = vpop.permute.xlu0 %1709 }
 0x577   : > { %v1712_v9 = vpop.permute.xlu1 %1711 }
 0x579   : > { %v1726_v28 = vpop.permute.xlu0 %1725 }
 0x57b   : > { %v1728_v61 = vpop.permute.xlu1 %1727 }
 0x57d   : > { %v1742_v4 = vpop.permute.xlu0 %1741 }
 0x57f   : > { %v1744_v21 = vpop.permute.xlu1 %1743 }
 0x581   : > { %v3667_v56 = vpop.permute.xlu0 %1757 }
 0x583   : > { %v3669_v13 = vpop.permute.xlu1 %1759 }
 0x585   : > { %v3671_v14 = vpop.permute.xlu0 %1773 }
 0x587   : > { %v3673_v34 = vpop.permute.xlu1 %1775 }
 0x589   : > { %v3675_v15 = vpop.permute.xlu0 %1789 }
 0x58b   : > { %v3677_v51 = vpop.permute.xlu1 %1791 }
 0x58d   : > { %v1698_v2 = vpop.permute.xlu0 %1697 }
 0x58e   : > { %v1701_v23 = vsel %vm527_vm1, %v1694_v1, %v1698_v2  ;;  %v1703_v48 = vsel %vm527_vm1, %v1698_v2, %v1694_v1 }
 0x58f   : > { %v1700_v60 = vpop.permute.xlu1 %1699  ;;  %v1705_v63 = vmul.f32 %v1703_v48, %v2586_v26  ;;  %v1706_v43 = vmul.f32 %v1701_v23, %v2561_v17 }
 0x590   : > { %v1702_v29 = vsel %vm527_vm1, %v1696_v52, %v1700_v60  ;;  %v1704_v5 = vsel %vm527_vm1, %v1700_v60, %v1696_v52 }
 0x591   : > { %v1707_v8 = vmul.f32 %v1704_v5, %v2586_v26  ;;  %v1708_v12 = vmul.f32 %v1702_v29, %v2561_v17  ;;  %v1714_v59 = vpop.permute.xlu0 %1713 }
 0x592   : > { %v1717_v37 = vsel %vm560_vm0, %v1710_v53, %v1714_v59  ;;  %v1719_v33 = vsel %vm560_vm0, %v1714_v59, %v1710_v53 }
 0x593   : > { %v1821_v54 = vpack.c.bf16 %v1707_v8, %v1705_v63  ;;  %v1716_v7 = vpop.permute.xlu1 %1715  ;;  %v1822_v35 = vpack.c.bf16 %v1708_v12, %v1706_v43  ;;  %v1721_v26 = vmul.f32 %v1719_v33, %v2590_v27  ;;  %v1722_v17 = vmul.f32 %v1717_v37, %v2565_v18 }
 0x594   : > { %v1718_v50 = vsel %vm560_vm0, %v1712_v9, %v1716_v7  ;;  %v1720_v38 = vsel %vm560_vm0, %v1716_v7, %v1712_v9  ;;  %vm1948_vm0 = vcmp.eq.s32.totalorder %v2544_v11, 0  ;;  %v3856_v11 = vld [vmem:[#allocation9_spill] sm:$0xff] (!%p2159_p9) }
 0x595   : > { %v1723_v3 = vmul.f32 %v1720_v38, %v2590_v27  ;;  %v1724_v6 = vmul.f32 %v1718_v50, %v2565_v18  ;;  %v1730_v25 = vpop.permute.xlu0 %1729  ;;  %1850 = vmatprep.subr.bf16.mxu1 %v1822_v35  ;;  %vm1985_vm1 = vcmp.eq.s32.totalorder (!%p2159_p9), %v3856_v11, 1 }
 0x596   : > { %v1733_v22 = vsel %vm593_vm2, %v1726_v28, %v1730_v25  ;;  %v1735_v45 = vsel %vm593_vm2, %v1730_v25, %v1726_v28  ;;  %1851 = vmatpush1.bf16.msra.mxu1 %v1821_v54 }
 0x597   : > { %v1823_v39 = vpack.c.bf16 %v1723_v3, %v1721_v26  ;;  %v1732_v47 = vpop.permute.xlu1 %1731  ;;  %v1824_v1 = vpack.c.bf16 %v1724_v6, %v1722_v17  ;;  %v1737_v18 = vmul.f32 %v1735_v45, %v2638_v49  ;;  %v1738_v53 = vmul.f32 %v1733_v22, %v2615_v40 }
 0x598   : > { %v1734_v52 = vsel %vm593_vm2, %v1728_v61, %v1732_v47  ;;  %v1736_v27 = vsel %vm593_vm2, %v1732_v47, %v1728_v61  ;;  %vm1983_vm2 = vcmp.eq.s32.totalorder (!%p2159_p9), %v3856_v11, 0 }
 0x599   : > { %v1739_v9 = vmul.f32 %v1736_v27, %v2638_v49  ;;  %v1740_v2 = vmul.f32 %v1734_v52, %v2615_v40  ;;  %v1746_v23 = vpop.permute.xlu0 %1745  ;;  %1852 = vmatprep.subr.bf16.mxu1 %v1824_v1 }
 0x59a   : > { %v1749_v28 = vsel %vm626_vm3, %v1742_v4, %v1746_v23  ;;  %v1751_v48 = vsel %vm626_vm3, %v1746_v23, %v1742_v4  ;;  %1853 = vmatpush1.bf16.msra.mxu1 %v1823_v39 }
 0x59b   : > { %v1825_v60 = vpack.c.bf16 %v1739_v9, %v1737_v18  ;;  %v1748_v29 = vpop.permute.xlu1 %1747  ;;  %v1826_v61 = vpack.c.bf16 %v1740_v2, %v1738_v53  ;;  %v1753_v40 = vmul.f32 %v1751_v48, %v2632_v46  ;;  %v1754_v63 = vmul.f32 %v1749_v28, %v2620_v41 }
 0x59c   : > { %v1750_v5 = vsel %vm626_vm3, %v1744_v21, %v1748_v29  ;;  %v1752_v49 = vsel %vm626_vm3, %v1748_v29, %v1744_v21 }
 0x59d   : > { %v1755_v43 = vmul.f32 %v1752_v49, %v2632_v46  ;;  %v1756_v8 = vmul.f32 %v1750_v5, %v2620_v41  ;;  %v1806_v12 = vpop.permute.xlu0 %1805  ;;  %1854 = vmatprep.subr.bf16.mxu1 %v1826_v61  ;;  %v2152_v61 = vcombine.low %v3658_v57, %v3658_v57 }
 0x59e   : > { %1855 = vmatpush1.bf16.msra.mxu1 %v1825_v60 }
 0x59f   : > { %v1827_v4 = vpack.c.bf16 %v1755_v43, %v1753_v40  ;;  %v1808_v59 = vpop.permute.xlu1 %1807  ;;  %v1828_v37 = vpack.c.bf16 %v1756_v8, %v1754_v63 }
 0x5a1   : > { %v1762_v33 = vpop.permute.xlu0 %1761  ;;  %1856 = vmatprep.subr.bf16.mxu1 %v1828_v37 }
 0x5a2   : > { %v1765_v21 = vsel %vm659_vm4, %v3667_v56, %v1762_v33  ;;  %v1767_v54 = vsel %vm659_vm4, %v1762_v33, %v3667_v56  ;;  %1857 = vmatpush1.bf16.msra.mxu1 %v1827_v4 }
 0x5a3   : > { %v1764_v46 = vpop.permute.xlu1 %1763  ;;  %1858 = vmatprep.subr.bf16.mxu1 %v1830_v19  ;;  %v1769_v35 = vmul.f32 %v1765_v21, %v2668_v0  ;;  %v1770_v50 = vmul.f32 %v1767_v54, %v2658_v58 }
 0x5a4   : > { %v1766_v41 = vsel %vm659_vm4, %v3669_v13, %v1764_v46  ;;  %v1768_v7 = vsel %vm659_vm4, %v1764_v46, %v3669_v13 }
 0x5a5   : > { %v1771_v56 = vmul.f32 %v1766_v41, %v2668_v0  ;;  %v1772_v38 = vmul.f32 %v1768_v7, %v2658_v58  ;;  %v1778_v26 = vpop.permute.xlu0 %1777  ;;  %v2259_v7 = vld [vmem:[%s2414_s16] sm:$0xff] }
 0x5a6   : > { %v1781_v36 = vsel %vm692_vm5, %v3671_v14, %v1778_v26  ;;  %v1783_v24 = vsel %vm692_vm5, %v1778_v26, %v3671_v14  ;;  %1859 = vmatpush1.bf16.msra.mxu1 %v1829_v20 }
 0x5a7   : > { %v1831_v19 = vpack.c.bf16 %v1771_v56, %v1769_v35  ;;  %v1780_v13 = vpop.permute.xlu1 %1779  ;;  %v1832_v17 = vpack.c.bf16 %v1772_v38, %v1770_v50  ;;  %v1785_v3 = vmul.f32 %v1781_v36, %v2709_v42  ;;  %v1786_v6 = vmul.f32 %v1783_v24, %v2689_v31  ;;  %v2260_v50 = vld [vmem:[%s2414_s16 + $0x8] sm:$0xff]  ;;  %s2313_s16 = smov 1e-12  }
 0x5a8   : > { %v1782_v58 = vsel %vm692_vm5, %v3673_v34, %v1780_v13  ;;  %v1784_v0 = vsel %vm692_vm5, %v1780_v13, %v3673_v34 }
 0x5a9   : > { %v1787_v14 = vmul.f32 %v1782_v58, %v2709_v42  ;;  %v1788_v55 = vmul.f32 %v1784_v0, %v2689_v31  ;;  %v1794_v10 = vpop.permute.xlu0 %1793  ;;  %1860 = vmatprep.subr.bf16.mxu1 %v1832_v17 }
 0x5aa   : > { %v1797_v20 = vsel %vm725_vm6, %v3675_v15, %v1794_v10  ;;  %v1799_v25 = vsel %vm725_vm6, %v1794_v10, %v3675_v15  ;;  %1861 = vmatpush1.bf16.msra.mxu1 %v1831_v19 }
 0x5ab   : > { %v1833_v34 = vpack.c.bf16 %v1787_v14, %v1785_v3  ;;  %v1796_v22 = vpop.permute.xlu1 %1795  ;;  %v1834_v45 = vpack.c.bf16 %v1788_v55, %v1786_v6  ;;  %v1801_v39 = vmul.f32 %v1797_v20, %v2714_v44  ;;  %v1802_v47 = vmul.f32 %v1799_v25, %v2694_v32 }
 0x5ac   : > { %v1798_v42 = vsel %vm725_vm6, %v3677_v51, %v1796_v22  ;;  %v1800_v31 = vsel %vm725_vm6, %v1796_v22, %v3677_v51 }
 0x5ad   : > { %v1803_v1 = vmul.f32 %v1798_v42, %v2714_v44  ;;  %v1804_v15 = vmul.f32 %v1800_v31, %v2694_v32  ;;  %v1810_v52 = vpop.permute.xlu0 %1809  ;;  %1862 = vmatprep.subr.bf16.mxu1 %v1834_v45 }
 0x5ae   : > { %v1813_v27 = vsel %vm758_vm8, %v1806_v12, %v1810_v52  ;;  %v1815_v18 = vsel %vm758_vm8, %v1810_v52, %v1806_v12  ;;  %1863 = vmatpush1.bf16.msra.mxu1 %v1833_v34 }
 0x5af   : > { %v1835_v53 = vpack.c.bf16 %v1803_v1, %v1801_v39  ;;  %v1812_v9 = vpop.permute.xlu1 %1811  ;;  %v1836_v51 = vpack.c.bf16 %v1804_v15, %v1802_v47  ;;  %v1817_v32 = vmul.f32 %v3547_v16, %v1813_v27  ;;  %v1818_v23 = vmul.f32 %v3553_v62, %v1815_v18 }
 0x5b0   : > { %v1814_v2 = vsel %vm758_vm8, %v1808_v59, %v1812_v9  ;;  %v1816_v44 = vsel %vm758_vm8, %v1812_v9, %v1808_v59 }
 0x5b1   : > { %v1819_v28 = vmul.f32 %v3547_v16, %v1814_v2  ;;  %v1820_v48 = vmul.f32 %v3553_v62, %v1816_v44  ;;  %1864 = vmatprep.subr.bf16.mxu1 %v1836_v51 }
 0x5b2   : > { %1865 = vmatpush1.bf16.msra.mxu1 %v1835_v53 }
 0x5b3   : > { %v1837_v60 = vpack.c.bf16 %v1819_v28, %v1817_v32  ;;  %v1838_v29 = vpack.c.bf16 %v1820_v48, %v1818_v23 }
 0x5b5   : > { %1866 = vmatprep.subr.bf16.mxu1 %v1838_v29 }
 0x5b6   : > { %1867 = vmatpush1.bf16.msra.mxu1 %v1837_v60 }
 0x5b7   : > { %1868 = vmatprep.subr.bf16.mxu1 %v3576_v30 }
 0x5ba   : > { %1869 = vmatpush1.bf16.msra.mxu1 %v3576_v30 }
 0x5bd   : > { %1883 = vmatmul.mubr.bf16.vlgmr.msra.gmra.mrb[8].mxu1 %v2152_v61 }
 0x5e7   : > { %v1919_v5 = vpop.xlane.xlu0 %1918 }
 0x5e8   : > { %v1920_v49 = vrot.slane %v1919_v5, 4 }
 0x5ea   : > { %v1921_v40 = vadd.f32 %v1920_v49, %v1919_v5 }
 0x5ec   : > { %v1922_v16 = vrot.slane %v1921_v40, 2 }
 0x5ee   : > { %v1923_v63 = vadd.f32 %v1922_v16, %v1921_v40 }
 0x5f0   : > { %v1924_v62 = vrot.slane %v1923_v63, 1 }
 0x5f2   : > { %v1925_v43 = vadd.f32 %v1924_v62, %v1923_v63 }
 0x5f4   : > { %2170 = vpush %v1925_v43 }
 0x625   : > { %s2171_s22 = spop %2170 }
 0x626   : > { %s1927_s28 = smul.f32 -0.5, %s2171_s22 }
 0x628   : > { %s1928_s29 = smul.f32 0.5, %s1927_s28 }
 0x62a   : > { %s1970_s30 = sadd.f32 %s2157_s19, %s1928_s29 }
 0x62c   : > { %1972 = sst [smem:[#allocation3 + $0x1]] %s1970_s30 }
 0x62d   : > { %s2160_s15 = sld [smem:[#allocation3 + $0x1]] (!%p2159_p9) }
 0x633   : > { %v1988_v15 = vstv (!%p2159_p9), %s2160_s15 }
 0x690   : > { %v1884_v8 = vpop.f32.mrb[8].mxu1 }
 0x691   : > { %v2155_v12 = vmul.f32 -1.442695, %v1884_v8  ;;  %v1886_v57 = vpop.f32.mrb[9].mxu1 }
 0x692   : > { %v2156_v30 = vmul.f32 -1.442695, %v1886_v57  ;;  %v1888_v4 = vpop.f32.mrb[10].mxu1 }
 0x693   : > { %2247 = vpow2.f32 %v2155_v12  ;;  %v1889_v59 = vpop.f32.mrb[11].mxu1 }
 0x694   : > { %2249 = vpow2.f32 %v2156_v30 }
 0x69d   : > { %v2248_v37 = vpop.eup %2247 }
 0x69e   : > { %v2250_v33 = vpop.eup %2249  ;;  %v1897_v21 = vadd.f32 1.0, %v2248_v37 }
 0x69f   : > { %v1898_v54 = vadd.f32 1.0, %v2250_v33 }
 0x6a0   : > { %2251 = vrcp.f32 %v1897_v21 }
 0x6a1   : > { %2253 = vrcp.f32 %v1898_v54 }
 0x6aa   : > { %v2252_v46 = vpop.eup %2251 }
 0x6ab   : > { %v2254_v41 = vpop.eup %2253  ;;  %1903 = vst [vmem:[#allocation2] sm:$0xff] %v2252_v46  ;;  %v1929_v35 = vsub.f32 %v2252_v46, %v2259_v7 }
 0x6ac   : > { %1904 = vst [vmem:[#allocation2 + $0x8] sm:$0xff] %v2254_v41  ;;  %v1930_v56 = vsub.f32 %v2254_v41, %v2260_v50 }
 0x6ad   : > { %v1931_v38 = vmul.f32 %v1929_v35, %v1929_v35 }
 0x6ae   : > { %v1932_v26 = vmul.f32 %v1930_v56, %v1930_v56 }
 0x6af   : > { %v1934_v36 = vsel %vm1933_vm15, %v1931_v38, 0.0 }
 0x6b0   : > { %v1935_v24 = vsel %vm1933_vm15, %v1932_v26, 0.0 }
 0x6b1   : > { %v1936_v19 = vadd.f32 %v1935_v24, %v1934_v36 }
 0x6b3   : > { %1937 = vadd.xlane.f32.xlu1 %v1936_v19 }
 0x740   : > { %v1938_v13 = vpop.xlane.xlu1 %1937 }
 0x741   : > { %v1939_v17 = vrot.slane %v1938_v13, 4 }
 0x743   : > { %v1940_v58 = vadd.f32 %v1939_v17, %v1938_v13 }
 0x745   : > { %v1941_v0 = vrot.slane %v1940_v58, 2 }
 0x747   : > { %v1942_v3 = vadd.f32 %v1941_v0, %v1940_v58 }
 0x749   : > { %v1943_v6 = vrot.slane %v1942_v3, 1 }
 0x74b   : > { %v1944_v14 = vadd.f32 %v1943_v6, %v1942_v3 }
 0x74d   : > { %2172 = vpush %v1944_v14 }
 0x77e   : > { %s2173_s14 = spop %2172 }
 0x77f   : > { %s1946_s20 = smul.f32 0.0013020834, %s2173_s14 }
 0x781   : > { %s1949_s21 = smax.f32 %s2313_s16, %s1946_s20  ;;  %s1966_s23 = sadd.f32 %s1965_s11, %s1946_s20 }
 0x782   : > { %v1950_v55 = vstv %s1949_s21 }
 0x783   : > { %v1951_v10 = vsel %vm1948_vm0, %v1950_v55, 1.0  ;;  %1968 = sst [smem:[#allocation3]] %s1966_s23 }
 0x784   : > { %2255 = vlog2.f32 %v1951_v10  ;;  %s1984_s27 = sld [smem:[#allocation3]] (!%p2159_p9) }
 0x78a   : > { %v1991_v52 = vstv (!%p2159_p9), %s1984_s27 }
 0x78e   : > { %v2256_v20 = vpop.eup %2255 }
 0x78f   : > { %v1953_v25 = vmul.f32 0.6931472, %v2256_v20 }
 0x791   : > { %v1954_v34 = vsel %vm1597_vm12, %v1953_v25, 0.0 }
 0x792   : > { %1955 = vadd.xlane.f32.xlu0 %v1954_v34 }
 0x81f   : > { %v1956_v22 = vpop.xlane.xlu0 %1955 }
 0x820   : > { %v1957_v45 = vrot.slane %v1956_v22, 4 }
 0x822   : > { %v1958_v42 = vadd.f32 %v1957_v45, %v1956_v22 }
 0x824   : > { %v1959_v31 = vrot.slane %v1958_v42, 2 }
 0x826   : > { %v1960_v39 = vadd.f32 %v1959_v31, %v1958_v42 }
 0x828   : > { %v1961_v47 = vrot.slane %v1960_v39, 1 }
 0x82a   : > { %v1962_v1 = vadd.f32 %v1961_v47, %v1960_v39 }
 0x82c   : > { %2174 = vpush %v1962_v1 }
 0x85c   : > { %1980 = sbr.rel (%p2159_p9) target bundleno = 2157 (0x86d), region = 68 }
 0x85d   : > { %s2175_s25 = spop %2174 }
 0x85e   : > { %s1964_s26 = smul.f32 -4.3429446, %s2175_s25 }
 0x860   : > { %s1974_s18 = sadd.f32 %s2158_s24, %s1964_s26 }
 0x862   : > { %1976 = sst [smem:[#allocation3 + $0x2]] %s1974_s18 }
 0x863   : > { %s2161_s17 = sld [smem:[#allocation3 + $0x2]] }
 0x869   : > { %v1989_v27 = vstv %s2161_s17 }
 0x86a   : > { %v1990_v18 = vsel %vm1985_vm1, %v1988_v15, %v1989_v27 }
 0x86b   : > { %v1992_v53 = vsel %vm1983_vm2, %v1991_v52, %v1990_v18 }
 0x86c   : > { %1993 = vst [vmem:[%s2409_s12] sm:$0x7] %v1992_v53 }
 0x86d PF: > { %s3857_s19 = sld [smem:[#allocation6_spill]]  ;;  %s3858_s13 = sld [smem:[#allocation4_spill]] }
 0x86e   : > { %s3859_s14 = sld [smem:[#allocation5_spill]]  ;;  %s3860_s15 = sld [smem:[#allocation7_spill]] }
 0x86f   : > { %s3861_s16 = sld [smem:[#allocation8_spill]] }
 0x873   : > { %s20_s17 = sadd.s32 1, %s3857_s19  }
 0x874   : > { %p17_p10 = scmp.ge.s32.totalorder %s20_s17, 6  }
 0x876   :  { %19 = sbr.rel (!%p17_p10) target bundleno = 3 (0x3), region = 113 }

</bundles_post_ra>
